<compile_context>
chip_gen: v5e
topology: v5e:2x2
jax: 0.10.0
libtpu: 0.0.40
codegen_flags: <defaults>
</compile_context>

<pallas_src>
import math
import functools

import jax
import jax.numpy as jnp
from jax.experimental import pallas as pl
from jax.experimental.pallas import tpu as pltpu


# --------------------------------------------------------------------------- #
# Kernel
# --------------------------------------------------------------------------- #
def _attention_kernel(text_ref, image_ref,
                      wq_ref, bq_ref,
                      wv_ref, bv_ref,
                      wk_ref, kb_ref,
                      wsb_ref, bsb_ref,
                      sparse_ref,
                      o_ref, *, bb, t_len, n_blk, d_t, d_i, d_o, reorder_k):
    # Per-step tiles: text (BB, T, Dt), image (BB, N, Di), both bf16.
    t3 = text_ref[...]
    im3 = image_ref[...]

    # ---- Q projection (1/sqrt(dk) folded): one (BB*T, Dt) @ (Dt, Dt) matmul --
    t2 = t3.reshape(bb * t_len, d_t)
    q2 = jnp.dot(t2, wq_ref[...], preferred_element_type=jnp.float32) + bq_ref[...]
    q3 = q2.reshape(bb, t_len, d_t).astype(jnp.bfloat16)

    # ---- V projection: one (BB*N, Di) @ (Di, Do) matmul (Do lane-padded) ----
    im2 = im3.reshape(bb * n_blk, d_i)
    v2 = jnp.dot(im2, wv_ref[...], preferred_element_type=jnp.float32) + bv_ref[...]
    v3 = v2.reshape(bb, n_blk, d_o).astype(jnp.bfloat16)

    # ---- batch-broadcast the single (T, N) sparse pattern (no HBM replication)
    sp_b = jnp.broadcast_to(sparse_ref[...][None], (bb, t_len, n_blk))

    if reorder_k:
        # sparse @ (im @ Wk^T + bk) == (sparse @ im) @ Wk^T + rowsum(sparse)(x)bk
        # Wk projection runs on BB*T rows (cheaper when T < N).
        sim3 = jnp.einsum('btn,bnd->btd', sp_b, im3,
                          preferred_element_type=jnp.float32)      # (BB,T,Di) f32
        sim2 = sim3.reshape(bb * t_len, d_i).astype(jnp.bfloat16)
        sk2 = jnp.dot(sim2, wk_ref[...], preferred_element_type=jnp.float32)
        sk3 = (sk2.reshape(bb, t_len, d_i) + kb_ref[...][None]).astype(jnp.bfloat16)
    else:
        # Original order: k = im @ Wk^T + bk, then sparse @ k (cheaper when T >= N).
        k2 = jnp.dot(im2, wk_ref[...], preferred_element_type=jnp.float32) + kb_ref[...]
        k3 = k2.reshape(bb, n_blk, d_i).astype(jnp.bfloat16)
        sk3 = jnp.einsum('btn,bnd->btd', sp_b, k3,
                         preferred_element_type=jnp.float32).astype(jnp.bfloat16)

    # ---- scores = (q / sqrt(dk)) @ sk^T  (transpose folded into contraction) --
    scores3 = jnp.einsum('btd,bsd->bts', q3, sk3,
                         preferred_element_type=jnp.float32)       # (BB,T,T) f32

    # ---- seq_len_to_block: (BB*T, T) @ (T, N) + bsb --------------------------
    scores2 = scores3.reshape(bb * t_len, t_len).astype(jnp.bfloat16)
    logits2 = jnp.dot(scores2, wsb_ref[...],
                      preferred_element_type=jnp.float32) + bsb_ref[...]

    # ---- softmax over N (f32); denominator reciprocal on the EUP -------------
    m = jnp.max(logits2, axis=-1, keepdims=True)
    e = jnp.exp(logits2 - m)
    s = jnp.sum(e, axis=-1, keepdims=True)
    attn2 = e * pl.reciprocal(s, approx=True)
    attn3 = attn2.reshape(bb, t_len, n_blk).astype(jnp.bfloat16)

    # ---- out = softmax(...) @ v ----------------------------------------------
    out3 = jnp.einsum('btn,bnd->btd', attn3, v3,
                      preferred_element_type=jnp.float32)          # (BB,T,Do)
    o_ref[...] = out3.astype(o_ref.dtype)


# --------------------------------------------------------------------------- #
# Sizing helpers
# --------------------------------------------------------------------------- #
def _vmem_capacity_bytes():
    try:
        info = pltpu.get_tpu_info()
        cap = getattr(info, "vmem_capacity_bytes", None)
        if cap:
            return int(cap)
    except Exception:
        pass
    return 64 << 20  # conservative default (v7x per-TensorCore)


def _vmem_bytes_estimate(bb, t, n, dt, di, d_o, out_itemsize, reorder):
    """Rough per-step VMEM footprint: pipelined tiles + constants + temporaries."""
    bf2, f4 = 2, 4
    # Double-buffered, grid-varying tiles.
    tiles = 2 * (bb * t * dt * bf2            # text
                 + bb * n * di * bf2          # image
                 + bb * t * d_o * out_itemsize)  # output
    # Constant operands (single-buffered via pl.Buffered(1)).
    consts = (dt * dt * bf2 + di * di * bf2 + di * d_o * bf2   # wq, wk, wv
              + 2 * t * n * bf2                                # wsb_t, sparse
              + (dt + d_o + n) * f4)                           # biases
    consts += (t * di * f4) if reorder else (di * f4)          # skb or bk
    # In-kernel f32 + bf16 temporaries (upper bound, not double-buffered).
    inter = f4 * bb * (t * dt + n * d_o + 2 * t * di + t * t + t * n + t * d_o)
    inter += bf2 * bb * (t * dt + n * d_o + t * di + t * t + 2 * t * n)
    return tiles + consts + inter


def _pick_block_batch(b, t, est_fn, budget, *, min_grid=2, rows_cap=2048):
    """Largest divisor of b fitting the VMEM budget, keeping >= min_grid steps
    (so both v7x TensorCores get work) and <= rows_cap rows per matmul."""
    best = 1
    for cand in range(1, b + 1):
        if b % cand:
            continue
        if b >= min_grid and (b // cand) < min_grid:
            continue
        if cand * t > rows_cap:
            continue
        if est_fn(cand) > budget:
            continue
        best = cand
    return best


# --------------------------------------------------------------------------- #
# Wrapper
# --------------------------------------------------------------------------- #
def text_sparse_attention_forward(text_feature, image_feature, params,
                                  *, window_size, sparsity, block_batch=None):
    """Pallas implementation of TextSparseAttention.forward."""
    B, T, Dt = text_feature.shape
    _, N, Di = image_feature.shape
    assert Dt == Di, "forward requires text_hidden_dim == image_hidden_dim"

    wq, bq = params["wq"], params["bq"]        # (Dt, Dt), (Dt,)
    wk, bk = params["wk"], params["bk"]        # (Di, Di), (Di,)
    wv, bv = params["wv"], params["bv"]        # (Di, Di), (Di,)
    wsb, bsb = params["wsb"], params["bsb"]    # (N, T),  (N,)

    # ---- parameter-only sparse-pattern precompute (plain JAX, f32) ----------
    i = jnp.arange(T)[:, None]
    j = jnp.arange(T)[None, :]
    mask = ((j >= i - window_size) & (j <= i + window_size)).astype(jnp.float32)
    attn_w = jax.nn.softmax(mask, axis=-1) @ wsb.T + bsb              # (T, N)
    num_nonzero = int(N // sparsity) + 2 * window_size
    topk_scores, topk_idx = jax.lax.top_k(attn_w, num_nonzero)        # (T, k)
    rows = jnp.arange(T)[:, None]
    sparse_attn = jnp.zeros((T, N), jnp.float32).at[rows, topk_idx].set(topk_scores)

    inv_sqrt_dk = 1.0 / math.sqrt(Dt)

    # Lane-dense output: pad the V-projection output dim to a 128 multiple.
    d_o = Di if Di % 128 == 0 else ((Di + 127) // 128) * 128

    # bf16 weights; 1/sqrt(d_k) folded into the Q projection.
    wq_t = (wq.T * inv_sqrt_dk).astype(jnp.bfloat16)                  # (Dt, Dt)
    wk_t = wk.T.astype(jnp.bfloat16)                                  # (Di, Di)
    wv_t = wv.T.astype(jnp.bfloat16)                                  # (Di, Do)
    wsb_t = wsb.T.astype(jnp.bfloat16)                                # (T, N)
    bq2 = (bq * inv_sqrt_dk)[None, :].astype(jnp.float32)             # (1, Dt)
    bv2 = bv[None, :].astype(jnp.float32)                             # (1, Do)
    bsb2 = bsb[None, :].astype(jnp.float32)                           # (1, N)
    if d_o != Di:
        wv_t = jnp.pad(wv_t, ((0, 0), (0, d_o - Di)))
        bv2 = jnp.pad(bv2, ((0, 0), (0, d_o - Di)))

    # K-path order is chosen by cost: Wk projection on min(T, N) rows.
    reorder_k = T < N
    if reorder_k:
        # sparse @ (im@Wk^T + bk) == (sparse@im)@Wk^T + rowsum(sparse) (x) bk
        kb = (jnp.sum(sparse_attn, axis=-1, keepdims=True)
              * bk[None, :]).astype(jnp.float32)                      # (T, Di)
    else:
        kb = bk[None, :].astype(jnp.float32)                          # (1, Di)

    # Single (T, N) sparse operand; broadcast over the batch inside the kernel.
    sparse_bf = sparse_attn.astype(jnp.bfloat16)

    text_bf = text_feature.astype(jnp.bfloat16)
    image_bf = image_feature.astype(jnp.bfloat16)

    out_dtype = text_feature.dtype
    out_itemsize = jnp.dtype(out_dtype).itemsize

    # VMEM budget: ~40 MiB on v7x (64 MiB/TC), capped at 80 MiB on v5e/v6e.
    budget = min(int(_vmem_capacity_bytes() * 0.625), 80 << 20)
    est = lambda bb: _vmem_bytes_estimate(bb, T, N, Dt, Di, d_o,
                                          out_itemsize, reorder_k)
    if block_batch is None:
        block_batch = _pick_block_batch(B, T, est, budget, min_grid=2)
    assert B % block_batch == 0
    grid_b = B // block_batch
    vmem_limit = int(min(budget, max(32 << 20, 2 * est(block_batch))))

    kernel = functools.partial(_attention_kernel, bb=block_batch, t_len=T,
                               n_blk=N, d_t=Dt, d_i=Di, d_o=d_o,
                               reorder_k=reorder_k)

    def _run(single_buffer_consts):
        if single_buffer_consts:
            def const_spec(a):
                nd = a.ndim
                return pl.BlockSpec(a.shape, lambda b, _nd=nd: (0,) * _nd,
                                    pipeline_mode=pl.Buffered(1))
        else:
            def const_spec(a):
                nd = a.ndim
                return pl.BlockSpec(a.shape, lambda b, _nd=nd: (0,) * _nd)

        return pl.pallas_call(
            kernel,
            out_shape=jax.ShapeDtypeStruct((B, T, d_o), out_dtype),
            grid_spec=pltpu.PrefetchScalarGridSpec(
                num_scalar_prefetch=0,
                grid=(grid_b,),
                in_specs=[
                    pl.BlockSpec((block_batch, T, Dt), lambda b: (b, 0, 0)),  # text
                    pl.BlockSpec((block_batch, N, Di), lambda b: (b, 0, 0)),  # image
                    const_spec(wq_t), const_spec(bq2),
                    const_spec(wv_t), const_spec(bv2),
                    const_spec(wk_t), const_spec(kb),
                    const_spec(wsb_t), const_spec(bsb2),
                    const_spec(sparse_bf),
                ],
                out_specs=pl.BlockSpec((block_batch, T, d_o), lambda b: (b, 0, 0)),
            ),
            compiler_params=pltpu.CompilerParams(
                dimension_semantics=("parallel",),
                vmem_limit_bytes=vmem_limit),
        )(text_bf, image_bf,
          wq_t, bq2, wv_t, bv2, wk_t, kb, wsb_t, bsb2, sparse_bf)

    try:
        out = _run(single_buffer_consts=True)
    except Exception:
        # pl.Buffered(1) not supported on this JAX version: fall back to the
        # default double-buffered constant specs (correct, slightly more VMEM).
        out = _run(single_buffer_consts=False)

    if d_o != Di:
        out = out[..., :Di]
    return out


# --------------------------------------------------------------------------- #
# Pure-JAX f32 reference mirroring the PyTorch forward
# --------------------------------------------------------------------------- #
def _reference_forward(text_feature, image_feature, params,
                       *, window_size, sparsity):
    B, T, Dt = text_feature.shape
    _, N, Di = image_feature.shape
    wq, bq = params["wq"], params["bq"]
    wk, bk = params["wk"], params["bk"]
    wv, bv = params["wv"], params["bv"]
    wsb, bsb = params["wsb"], params["bsb"]

    q = text_feature @ wq.T + bq
    k = image_feature @ wk.T + bk
    v = image_feature @ wv.T + bv

    i = jnp.arange(T)[:, None]
    j = jnp.arange(T)[None, :]
    mask = ((j >= i - window_size) & (j <= i + window_size)).astype(jnp.float32)
    aw = jax.nn.softmax(mask, axis=-1)
    aw = jnp.broadcast_to(aw[None], (B, T, T))
    aw = aw @ wsb.T + bsb
    num_nonzero = int(N // sparsity) + 2 * window_size
    ts, ti = jax.lax.top_k(aw, num_nonzero)
    rows = jnp.arange(T)[None, :, None]
    bidx = jnp.arange(B)[:, None, None]
    sparse = jnp.zeros_like(aw).at[bidx, rows, ti].set(ts)

    out = jnp.einsum("btn,bnd->btd", sparse, k)
    out = jnp.einsum("btd,bsd->bts", q, out) / math.sqrt(Dt)
    out = out @ wsb.T + bsb
    out = jnp.einsum("btn,bnd->btd", jax.nn.softmax(out, axis=-1), v)
    return out


if __name__ == "__main__":
    # Small shapes consistent with the module's forward.
    B = 2
    T = 8          # text_seq_len
    N = 16         # image_block_num
    D = 32         # text_hidden_dim == image_hidden_dim
    window_size = 1
    sparsity = 2

    key = jax.random.PRNGKey(0)
    keys = jax.random.split(key, 10)
    scale = 0.1
    params = {
        "wq": scale * jax.random.normal(keys[0], (D, D), jnp.float32),
        "bq": scale * jax.random.normal(keys[1], (D,), jnp.float32),
        "wk": scale * jax.random.normal(keys[2], (D, D), jnp.float32),
        "bk": scale * jax.random.normal(keys[3], (D,), jnp.float32),
        "wv": scale * jax.random.normal(keys[4], (D, D), jnp.float32),
        "bv": scale * jax.random.normal(keys[5], (D,), jnp.float32),
        "wsb": scale * jax.random.normal(keys[6], (N, T), jnp.float32),
        "bsb": scale * jax.random.normal(keys[7], (N,), jnp.float32),
    }
    text_feature = jax.random.normal(keys[8], (B, T, D), jnp.float32)
    image_feature = jax.random.normal(keys[9], (B, N, D), jnp.float32)

    out = text_sparse_attention_forward(
        text_feature, image_feature, params,
        window_size=window_size, sparsity=sparsity)
    out = jax.block_until_ready(out)

    ref = _reference_forward(
        text_feature, image_feature, params,
        window_size=window_size, sparsity=sparsity)
    assert out.shape == (B, T, D)
    # bf16 inputs / f32 accumulation -> tolerance-based check vs f32 reference.
    assert jnp.allclose(out, ref, atol=2e-2, rtol=2e-2), "mismatch vs reference"

    print("KERNEL_OK")
</pallas_src>

<mosaic_0001>
module attributes {stable_mosaic.version = 11 : i64} {
  func.func @_attention_kernel(%arg0: i32, %arg1: memref<1x8x32xbf16, #tpu.memory_space<vmem>>, %arg2: memref<1x16x32xbf16, #tpu.memory_space<vmem>>, %arg3: memref<32x32xbf16, #tpu.memory_space<vmem>>, %arg4: memref<1x32xf32, #tpu.memory_space<vmem>>, %arg5: memref<32x128xbf16, #tpu.memory_space<vmem>>, %arg6: memref<1x128xf32, #tpu.memory_space<vmem>>, %arg7: memref<32x32xbf16, #tpu.memory_space<vmem>>, %arg8: memref<8x32xf32, #tpu.memory_space<vmem>>, %arg9: memref<8x16xbf16, #tpu.memory_space<vmem>>, %arg10: memref<1x16xf32, #tpu.memory_space<vmem>>, %arg11: memref<8x16xbf16, #tpu.memory_space<vmem>>, %arg12: memref<1x8x128xf32, #tpu.memory_space<vmem>>) attributes {dimension_semantics = [#tpu.dimension_semantics<parallel>], iteration_bounds = array<i64: 2>, scalar_prefetch = 0 : i64, scratch_operands = 0 : i64, tpu.core_type = #tpu.core_type<tc>, window_params = [{transform_indices = @transform_0, window_bounds = array<i64: 1, 8, 32>}, {transform_indices = @transform_1, window_bounds = array<i64: 1, 16, 32>}, {pipeline_mode = #tpu.pipeline_mode<synchronous>, transform_indices = @transform_2, window_bounds = array<i64: 32, 32>}, {pipeline_mode = #tpu.pipeline_mode<synchronous>, transform_indices = @transform_3, window_bounds = array<i64: 1, 32>}, {pipeline_mode = #tpu.pipeline_mode<synchronous>, transform_indices = @transform_4, window_bounds = array<i64: 32, 128>}, {pipeline_mode = #tpu.pipeline_mode<synchronous>, transform_indices = @transform_5, window_bounds = array<i64: 1, 128>}, {pipeline_mode = #tpu.pipeline_mode<synchronous>, transform_indices = @transform_6, window_bounds = array<i64: 32, 32>}, {pipeline_mode = #tpu.pipeline_mode<synchronous>, transform_indices = @transform_7, window_bounds = array<i64: 8, 32>}, {pipeline_mode = #tpu.pipeline_mode<synchronous>, transform_indices = @transform_8, window_bounds = array<i64: 8, 16>}, {pipeline_mode = #tpu.pipeline_mode<synchronous>, transform_indices = @transform_9, window_bounds = array<i64: 1, 16>}, {pipeline_mode = #tpu.pipeline_mode<synchronous>, transform_indices = @transform_10, window_bounds = array<i64: 8, 16>}, {transform_indices = @transform_11, window_bounds = array<i64: 1, 8, 128>}]} {
    %c0 = arith.constant 0 : index
    %c0_0 = arith.constant 0 : index
    %c0_1 = arith.constant 0 : index
    %0 = vector.load %arg1[%c0, %c0_0, %c0_1] : memref<1x8x32xbf16, #tpu.memory_space<vmem>>, vector<1x8x32xbf16>
    %c0_2 = arith.constant 0 : index
    %c0_3 = arith.constant 0 : index
    %c0_4 = arith.constant 0 : index
    %1 = vector.load %arg2[%c0_2, %c0_3, %c0_4] : memref<1x16x32xbf16, #tpu.memory_space<vmem>>, vector<1x16x32xbf16>
    %2 = vector.shape_cast %0 : vector<1x8x32xbf16> to vector<8x32xbf16>
    %c0_5 = arith.constant 0 : index
    %c0_6 = arith.constant 0 : index
    %3 = vector.load %arg3[%c0_5, %c0_6] : memref<32x32xbf16, #tpu.memory_space<vmem>>, vector<32x32xbf16>
    %cst = arith.constant dense<0.000000e+00> : vector<8x32xf32>
    %4 = tpu.matmul %2, %3, %cst {dimension_numbers = #tpu.dot_dimension_numbers<[1], [0], [0], [1], [0, 0, 1, 1], [], []>} : vector<8x32xbf16>, vector<32x32xbf16>, vector<8x32xf32> -> vector<8x32xf32>
    %c0_7 = arith.constant 0 : index
    %c0_8 = arith.constant 0 : index
    %5 = vector.load %arg4[%c0_7, %c0_8] : memref<1x32xf32, #tpu.memory_space<vmem>>, vector<1x32xf32>
    %6 = vector.broadcast %5 : vector<1x32xf32> to vector<8x32xf32>
    %7 = arith.addf %4, %6 : vector<8x32xf32>
    %8 = vector.shape_cast %7 : vector<8x32xf32> to vector<1x8x32xf32>
    %9 = arith.truncf %8 : vector<1x8x32xf32> to vector<1x8x32xbf16>
    %10 = vector.shape_cast %1 : vector<1x16x32xbf16> to vector<16x32xbf16>
    %c0_9 = arith.constant 0 : index
    %c0_10 = arith.constant 0 : index
    %11 = vector.load %arg5[%c0_9, %c0_10] : memref<32x128xbf16, #tpu.memory_space<vmem>>, vector<32x128xbf16>
    %cst_11 = arith.constant dense<0.000000e+00> : vector<16x128xf32>
    %12 = tpu.matmul %10, %11, %cst_11 {dimension_numbers = #tpu.dot_dimension_numbers<[1], [0], [0], [1], [0, 0, 1, 1], [], []>} : vector<16x32xbf16>, vector<32x128xbf16>, vector<16x128xf32> -> vector<16x128xf32>
    %c0_12 = arith.constant 0 : index
    %c0_13 = arith.constant 0 : index
    %13 = vector.load %arg6[%c0_12, %c0_13] : memref<1x128xf32, #tpu.memory_space<vmem>>, vector<1x128xf32>
    %14 = vector.broadcast %13 : vector<1x128xf32> to vector<16x128xf32>
    %15 = arith.addf %12, %14 : vector<16x128xf32>
    %16 = vector.shape_cast %15 : vector<16x128xf32> to vector<1x16x128xf32>
    %17 = arith.truncf %16 : vector<1x16x128xf32> to vector<1x16x128xbf16>
    %c0_14 = arith.constant 0 : index
    %c0_15 = arith.constant 0 : index
    %18 = vector.load %arg11[%c0_14, %c0_15] : memref<8x16xbf16, #tpu.memory_space<vmem>>, vector<8x16xbf16>
    %19 = vector.shape_cast %18 : vector<8x16xbf16> to vector<1x8x16xbf16>
    "tpu.trace_start"() <{level = 10 : i32, message = "btn,bnd->btd"}> : () -> ()
    %cst_16 = arith.constant dense<0.000000e+00> : vector<1x8x32xf32>
    %20 = tpu.matmul %19, %1, %cst_16 {dimension_numbers = #tpu.dot_dimension_numbers<[2], [1], [1], [2], [0, 0, 0, 1, 1, 2], [0], [0]>} : vector<1x8x16xbf16>, vector<1x16x32xbf16>, vector<1x8x32xf32> -> vector<1x8x32xf32>
    "tpu.trace_stop"() : () -> ()
    %21 = vector.shape_cast %20 : vector<1x8x32xf32> to vector<8x32xf32>
    %22 = arith.truncf %21 : vector<8x32xf32> to vector<8x32xbf16>
    %c0_17 = arith.constant 0 : index
    %c0_18 = arith.constant 0 : index
    %23 = vector.load %arg7[%c0_17, %c0_18] : memref<32x32xbf16, #tpu.memory_space<vmem>>, vector<32x32xbf16>
    %cst_19 = arith.constant dense<0.000000e+00> : vector<8x32xf32>
    %24 = tpu.matmul %22, %23, %cst_19 {dimension_numbers = #tpu.dot_dimension_numbers<[1], [0], [0], [1], [0, 0, 1, 1], [], []>} : vector<8x32xbf16>, vector<32x32xbf16>, vector<8x32xf32> -> vector<8x32xf32>
    %25 = vector.shape_cast %24 : vector<8x32xf32> to vector<1x8x32xf32>
    %c0_20 = arith.constant 0 : index
    %c0_21 = arith.constant 0 : index
    %26 = vector.load %arg8[%c0_20, %c0_21] : memref<8x32xf32, #tpu.memory_space<vmem>>, vector<8x32xf32>
    %27 = vector.shape_cast %26 : vector<8x32xf32> to vector<1x8x32xf32>
    %28 = arith.addf %25, %27 : vector<1x8x32xf32>
    %29 = arith.truncf %28 : vector<1x8x32xf32> to vector<1x8x32xbf16>
    "tpu.trace_start"() <{level = 10 : i32, message = "btd,bsd->bts"}> : () -> ()
    %cst_22 = arith.constant dense<0.000000e+00> : vector<1x8x8xf32>
    %30 = tpu.matmul %9, %29, %cst_22 {dimension_numbers = #tpu.dot_dimension_numbers<[2], [2], [1], [1], [0, 0, 0, 1, 1, 1], [0], [0]>} : vector<1x8x32xbf16>, vector<1x8x32xbf16>, vector<1x8x8xf32> -> vector<1x8x8xf32>
    "tpu.trace_stop"() : () -> ()
    %31 = vector.shape_cast %30 : vector<1x8x8xf32> to vector<8x8xf32>
    %32 = arith.truncf %31 : vector<8x8xf32> to vector<8x8xbf16>
    %c0_23 = arith.constant 0 : index
    %c0_24 = arith.constant 0 : index
    %33 = vector.load %arg9[%c0_23, %c0_24] : memref<8x16xbf16, #tpu.memory_space<vmem>>, vector<8x16xbf16>
    %cst_25 = arith.constant dense<0.000000e+00> : vector<8x16xf32>
    %34 = tpu.matmul %32, %33, %cst_25 {dimension_numbers = #tpu.dot_dimension_numbers<[1], [0], [0], [1], [0, 0, 1, 1], [], []>} : vector<8x8xbf16>, vector<8x16xbf16>, vector<8x16xf32> -> vector<8x16xf32>
    %c0_26 = arith.constant 0 : index
    %c0_27 = arith.constant 0 : index
    %35 = vector.load %arg10[%c0_26, %c0_27] : memref<1x16xf32, #tpu.memory_space<vmem>>, vector<1x16xf32>
    %36 = vector.broadcast %35 : vector<1x16xf32> to vector<8x16xf32>
    %37 = arith.addf %34, %36 : vector<8x16xf32>
    %cst_28 = arith.constant dense<0xFF800000> : vector<8xf32>
    %38 = vector.multi_reduction <maximumf>, %37, %cst_28 [1] : vector<8x16xf32> to vector<8xf32>
    %39 = vector.shape_cast %38 : vector<8xf32> to vector<8x1xf32>
    %40 = vector.broadcast %39 : vector<8x1xf32> to vector<8x16xf32>
    %41 = arith.subf %37, %40 : vector<8x16xf32>
    %42 = math.exp %41 : vector<8x16xf32>
    %cst_29 = arith.constant dense<0.000000e+00> : vector<8xf32>
    %43 = vector.multi_reduction <add>, %42, %cst_29 [1] : vector<8x16xf32> to vector<8xf32>
    %44 = vector.shape_cast %43 : vector<8xf32> to vector<8x1xf32>
    %45 = tpu.reciprocal %44 {approx = true} : vector<8x1xf32> -> vector<8x1xf32>
    %46 = vector.broadcast %45 : vector<8x1xf32> to vector<8x16xf32>
    %47 = arith.mulf %42, %46 : vector<8x16xf32>
    %48 = vector.shape_cast %47 : vector<8x16xf32> to vector<1x8x16xf32>
    %49 = arith.truncf %48 : vector<1x8x16xf32> to vector<1x8x16xbf16>
    "tpu.trace_start"() <{level = 10 : i32, message = "btn,bnd->btd"}> : () -> ()
    %cst_30 = arith.constant dense<0.000000e+00> : vector<1x8x128xf32>
    %50 = tpu.matmul %49, %17, %cst_30 {dimension_numbers = #tpu.dot_dimension_numbers<[2], [1], [1], [2], [0, 0, 0, 1, 1, 2], [0], [0]>} : vector<1x8x16xbf16>, vector<1x16x128xbf16>, vector<1x8x128xf32> -> vector<1x8x128xf32>
    "tpu.trace_stop"() : () -> ()
    %c0_31 = arith.constant 0 : index
    %c0_32 = arith.constant 0 : index
    %c0_33 = arith.constant 0 : index
    %51 = vector.load %arg12[%c0_31, %c0_32, %c0_33] : memref<1x8x128xf32, #tpu.memory_space<vmem>>, vector<1x8x128xf32>
    tpu.vector_store %arg12[%c0_31, %c0_32, %c0_33], %50 {strides = array<i32>} : memref<1x8x128xf32, #tpu.memory_space<vmem>>, vector<1x8x128xf32>,
    return
  }
  func.func @transform_0(%arg0: i32) -> (i32, i32, i32) {
    %c0_i32 = arith.constant 0 : i32
    %c0_i32_0 = arith.constant 0 : i32
    %c0_i32_1 = arith.constant 0 : i32
    return %arg0, %c0_i32, %c0_i32_0 : i32, i32, i32
  }
  func.func @transform_1(%arg0: i32) -> (i32, i32, i32) {
    %c0_i32 = arith.constant 0 : i32
    %c0_i32_0 = arith.constant 0 : i32
    %c0_i32_1 = arith.constant 0 : i32
    return %arg0, %c0_i32, %c0_i32_0 : i32, i32, i32
  }
  func.func @transform_2(%arg0: i32) -> (i32, i32) {
    %c0_i32 = arith.constant 0 : i32
    %c0_i32_0 = arith.constant 0 : i32
    %c0_i32_1 = arith.constant 0 : i32
    return %c0_i32, %c0_i32_0 : i32, i32
  }
  func.func @transform_3(%arg0: i32) -> (i32, i32) {
    %c0_i32 = arith.constant 0 : i32
    %c0_i32_0 = arith.constant 0 : i32
    %c0_i32_1 = arith.constant 0 : i32
    return %c0_i32, %c0_i32_0 : i32, i32
  }
  func.func @transform_4(%arg0: i32) -> (i32, i32) {
    %c0_i32 = arith.constant 0 : i32
    %c0_i32_0 = arith.constant 0 : i32
    %c0_i32_1 = arith.constant 0 : i32
    return %c0_i32, %c0_i32_0 : i32, i32
  }
  func.func @transform_5(%arg0: i32) -> (i32, i32) {
    %c0_i32 = arith.constant 0 : i32
    %c0_i32_0 = arith.constant 0 : i32
    %c0_i32_1 = arith.constant 0 : i32
    return %c0_i32, %c0_i32_0 : i32, i32
  }
  func.func @transform_6(%arg0: i32) -> (i32, i32) {
    %c0_i32 = arith.constant 0 : i32
    %c0_i32_0 = arith.constant 0 : i32
    %c0_i32_1 = arith.constant 0 : i32
    return %c0_i32, %c0_i32_0 : i32, i32
  }
  func.func @transform_7(%arg0: i32) -> (i32, i32) {
    %c0_i32 = arith.constant 0 : i32
    %c0_i32_0 = arith.constant 0 : i32
    %c0_i32_1 = arith.constant 0 : i32
    return %c0_i32, %c0_i32_0 : i32, i32
  }
  func.func @transform_8(%arg0: i32) -> (i32, i32) {
    %c0_i32 = arith.constant 0 : i32
    %c0_i32_0 = arith.constant 0 : i32
    %c0_i32_1 = arith.constant 0 : i32
    return %c0_i32, %c0_i32_0 : i32, i32
  }
  func.func @transform_9(%arg0: i32) -> (i32, i32) {
    %c0_i32 = arith.constant 0 : i32
    %c0_i32_0 = arith.constant 0 : i32
    %c0_i32_1 = arith.constant 0 : i32
    return %c0_i32, %c0_i32_0 : i32, i32
  }
  func.func @transform_10(%arg0: i32) -> (i32, i32) {
    %c0_i32 = arith.constant 0 : i32
    %c0_i32_0 = arith.constant 0 : i32
    %c0_i32_1 = arith.constant 0 : i32
    return %c0_i32, %c0_i32_0 : i32, i32
  }
  func.func @transform_11(%arg0: i32) -> (i32, i32, i32) {
    %c0_i32 = arith.constant 0 : i32
    %c0_i32_0 = arith.constant 0 : i32
    %c0_i32_1 = arith.constant 0 : i32
    return %arg0, %c0_i32, %c0_i32_0 : i32, i32, i32
  }
}

module attributes {stable_mosaic.version = 11 : i64} {
  func.func @_attention_kernel(%arg0: i32, %arg1: memref<1x8x32xbf16, #tpu.memory_space<vmem>>, %arg2: memref<1x16x32xbf16, #tpu.memory_space<vmem>>, %arg3: memref<32x32xbf16, #tpu.memory_space<vmem>>, %arg4: memref<1x32xf32, #tpu.memory_space<vmem>>, %arg5: memref<32x128xbf16, #tpu.memory_space<vmem>>, %arg6: memref<1x128xf32, #tpu.memory_space<vmem>>, %arg7: memref<32x32xbf16, #tpu.memory_space<vmem>>, %arg8: memref<8x32xf32, #tpu.memory_space<vmem>>, %arg9: memref<8x16xbf16, #tpu.memory_space<vmem>>, %arg10: memref<1x16xf32, #tpu.memory_space<vmem>>, %arg11: memref<8x16xbf16, #tpu.memory_space<vmem>>, %arg12: memref<1x8x128xf32, #tpu.memory_space<vmem>>) attributes {dimension_semantics = [#tpu.dimension_semantics<parallel>], iteration_bounds = array<i64: 2>, scalar_prefetch = 0 : i64, scratch_operands = 0 : i64, tpu.core_type = #tpu.core_type<tc>, window_params = [{transform_indices = @transform_0, window_bounds = array<i64: 1, 8, 32>}, {transform_indices = @transform_1, window_bounds = array<i64: 1, 16, 32>}, {pipeline_mode = #tpu.pipeline_mode<synchronous>, transform_indices = @transform_2, window_bounds = array<i64: 32, 32>}, {pipeline_mode = #tpu.pipeline_mode<synchronous>, transform_indices = @transform_3, window_bounds = array<i64: 1, 32>}, {pipeline_mode = #tpu.pipeline_mode<synchronous>, transform_indices = @transform_4, window_bounds = array<i64: 32, 128>}, {pipeline_mode = #tpu.pipeline_mode<synchronous>, transform_indices = @transform_5, window_bounds = array<i64: 1, 128>}, {pipeline_mode = #tpu.pipeline_mode<synchronous>, transform_indices = @transform_6, window_bounds = array<i64: 32, 32>}, {pipeline_mode = #tpu.pipeline_mode<synchronous>, transform_indices = @transform_7, window_bounds = array<i64: 8, 32>}, {pipeline_mode = #tpu.pipeline_mode<synchronous>, transform_indices = @transform_8, window_bounds = array<i64: 8, 16>}, {pipeline_mode = #tpu.pipeline_mode<synchronous>, transform_indices = @transform_9, window_bounds = array<i64: 1, 16>}, {pipeline_mode = #tpu.pipeline_mode<synchronous>, transform_indices = @transform_10, window_bounds = array<i64: 8, 16>}, {transform_indices = @transform_11, window_bounds = array<i64: 1, 8, 128>}]} {
    %c0 = arith.constant 0 : index
    %c0_0 = arith.constant 0 : index
    %c0_1 = arith.constant 0 : index
    %0 = vector.load %arg1[%c0, %c0_0, %c0_1] : memref<1x8x32xbf16, #tpu.memory_space<vmem>>, vector<1x8x32xbf16>
    %c0_2 = arith.constant 0 : index
    %c0_3 = arith.constant 0 : index
    %c0_4 = arith.constant 0 : index
    %1 = vector.load %arg2[%c0_2, %c0_3, %c0_4] : memref<1x16x32xbf16, #tpu.memory_space<vmem>>, vector<1x16x32xbf16>
    %2 = vector.shape_cast %0 : vector<1x8x32xbf16> to vector<8x32xbf16>
    %c0_5 = arith.constant 0 : index
    %c0_6 = arith.constant 0 : index
    %3 = vector.load %arg3[%c0_5, %c0_6] : memref<32x32xbf16, #tpu.memory_space<vmem>>, vector<32x32xbf16>
    %cst = arith.constant dense<0.000000e+00> : vector<8x32xf32>
    %4 = tpu.matmul %2, %3, %cst {dimension_numbers = #tpu.dot_dimension_numbers<[1], [0], [0], [1], [0, 0, 1, 1], [], []>} : vector<8x32xbf16>, vector<32x32xbf16>, vector<8x32xf32> -> vector<8x32xf32>
    %c0_7 = arith.constant 0 : index
    %c0_8 = arith.constant 0 : index
    %5 = vector.load %arg4[%c0_7, %c0_8] : memref<1x32xf32, #tpu.memory_space<vmem>>, vector<1x32xf32>
    %6 = vector.broadcast %5 : vector<1x32xf32> to vector<8x32xf32>
    %7 = arith.addf %4, %6 : vector<8x32xf32>
    %8 = vector.shape_cast %7 : vector<8x32xf32> to vector<1x8x32xf32>
    %9 = arith.truncf %8 : vector<1x8x32xf32> to vector<1x8x32xbf16>
    %10 = vector.shape_cast %1 : vector<1x16x32xbf16> to vector<16x32xbf16>
    %c0_9 = arith.constant 0 : index
    %c0_10 = arith.constant 0 : index
    %11 = vector.load %arg5[%c0_9, %c0_10] : memref<32x128xbf16, #tpu.memory_space<vmem>>, vector<32x128xbf16>
    %cst_11 = arith.constant dense<0.000000e+00> : vector<16x128xf32>
    %12 = tpu.matmul %10, %11, %cst_11 {dimension_numbers = #tpu.dot_dimension_numbers<[1], [0], [0], [1], [0, 0, 1, 1], [], []>} : vector<16x32xbf16>, vector<32x128xbf16>, vector<16x128xf32> -> vector<16x128xf32>
    %c0_12 = arith.constant 0 : index
    %c0_13 = arith.constant 0 : index
    %13 = vector.load %arg6[%c0_12, %c0_13] : memref<1x128xf32, #tpu.memory_space<vmem>>, vector<1x128xf32>
    %14 = vector.broadcast %13 : vector<1x128xf32> to vector<16x128xf32>
    %15 = arith.addf %12, %14 : vector<16x128xf32>
    %16 = vector.shape_cast %15 : vector<16x128xf32> to vector<1x16x128xf32>
    %17 = arith.truncf %16 : vector<1x16x128xf32> to vector<1x16x128xbf16>
    %c0_14 = arith.constant 0 : index
    %c0_15 = arith.constant 0 : index
    %18 = vector.load %arg11[%c0_14, %c0_15] : memref<8x16xbf16, #tpu.memory_space<vmem>>, vector<8x16xbf16>
    %19 = vector.shape_cast %18 : vector<8x16xbf16> to vector<1x8x16xbf16>
    "tpu.trace_start"() <{level = 10 : i32, message = "btn,bnd->btd"}> : () -> ()
    %cst_16 = arith.constant dense<0.000000e+00> : vector<1x8x32xf32>
    %20 = tpu.matmul %19, %1, %cst_16 {dimension_numbers = #tpu.dot_dimension_numbers<[2], [1], [1], [2], [0, 0, 0, 1, 1, 2], [0], [0]>} : vector<1x8x16xbf16>, vector<1x16x32xbf16>, vector<1x8x32xf32> -> vector<1x8x32xf32>
    "tpu.trace_stop"() : () -> ()
    %21 = vector.shape_cast %20 : vector<1x8x32xf32> to vector<8x32xf32>
    %22 = arith.truncf %21 : vector<8x32xf32> to vector<8x32xbf16>
    %c0_17 = arith.constant 0 : index
    %c0_18 = arith.constant 0 : index
    %23 = vector.load %arg7[%c0_17, %c0_18] : memref<32x32xbf16, #tpu.memory_space<vmem>>, vector<32x32xbf16>
    %cst_19 = arith.constant dense<0.000000e+00> : vector<8x32xf32>
    %24 = tpu.matmul %22, %23, %cst_19 {dimension_numbers = #tpu.dot_dimension_numbers<[1], [0], [0], [1], [0, 0, 1, 1], [], []>} : vector<8x32xbf16>, vector<32x32xbf16>, vector<8x32xf32> -> vector<8x32xf32>
    %25 = vector.shape_cast %24 : vector<8x32xf32> to vector<1x8x32xf32>
    %c0_20 = arith.constant 0 : index
    %c0_21 = arith.constant 0 : index
    %26 = vector.load %arg8[%c0_20, %c0_21] : memref<8x32xf32, #tpu.memory_space<vmem>>, vector<8x32xf32>
    %27 = vector.shape_cast %26 : vector<8x32xf32> to vector<1x8x32xf32>
    %28 = arith.addf %25, %27 : vector<1x8x32xf32>
    %29 = arith.truncf %28 : vector<1x8x32xf32> to vector<1x8x32xbf16>
    "tpu.trace_start"() <{level = 10 : i32, message = "btd,bsd->bts"}> : () -> ()
    %cst_22 = arith.constant dense<0.000000e+00> : vector<1x8x8xf32>
    %30 = tpu.matmul %9, %29, %cst_22 {dimension_numbers = #tpu.dot_dimension_numbers<[2], [2], [1], [1], [0, 0, 0, 1, 1, 1], [0], [0]>} : vector<1x8x32xbf16>, vector<1x8x32xbf16>, vector<1x8x8xf32> -> vector<1x8x8xf32>
    "tpu.trace_stop"() : () -> ()
    %31 = vector.shape_cast %30 : vector<1x8x8xf32> to vector<8x8xf32>
    %32 = arith.truncf %31 : vector<8x8xf32> to vector<8x8xbf16>
    %c0_23 = arith.constant 0 : index
    %c0_24 = arith.constant 0 : index
    %33 = vector.load %arg9[%c0_23, %c0_24] : memref<8x16xbf16, #tpu.memory_space<vmem>>, vector<8x16xbf16>
    %cst_25 = arith.constant dense<0.000000e+00> : vector<8x16xf32>
    %34 = tpu.matmul %32, %33, %cst_25 {dimension_numbers = #tpu.dot_dimension_numbers<[1], [0], [0], [1], [0, 0, 1, 1], [], []>} : vector<8x8xbf16>, vector<8x16xbf16>, vector<8x16xf32> -> vector<8x16xf32>
    %c0_26 = arith.constant 0 : index
    %c0_27 = arith.constant 0 : index
    %35 = vector.load %arg10[%c0_26, %c0_27] : memref<1x16xf32, #tpu.memory_space<vmem>>, vector<1x16xf32>
    %36 = vector.broadcast %35 : vector<1x16xf32> to vector<8x16xf32>
    %37 = arith.addf %34, %36 : vector<8x16xf32>
    %cst_28 = arith.constant dense<0xFF800000> : vector<8xf32>
    %38 = vector.multi_reduction <maximumf>, %37, %cst_28 [1] : vector<8x16xf32> to vector<8xf32>
    %39 = vector.shape_cast %38 : vector<8xf32> to vector<8x1xf32>
    %40 = vector.broadcast %39 : vector<8x1xf32> to vector<8x16xf32>
    %41 = arith.subf %37, %40 : vector<8x16xf32>
    %42 = math.exp %41 : vector<8x16xf32>
    %cst_29 = arith.constant dense<0.000000e+00> : vector<8xf32>
    %43 = vector.multi_reduction <add>, %42, %cst_29 [1] : vector<8x16xf32> to vector<8xf32>
    %44 = vector.shape_cast %43 : vector<8xf32> to vector<8x1xf32>
    %45 = tpu.reciprocal %44 {approx = true} : vector<8x1xf32> -> vector<8x1xf32>
    %46 = vector.broadcast %45 : vector<8x1xf32> to vector<8x16xf32>
    %47 = arith.mulf %42, %46 : vector<8x16xf32>
    %48 = vector.shape_cast %47 : vector<8x16xf32> to vector<1x8x16xf32>
    %49 = arith.truncf %48 : vector<1x8x16xf32> to vector<1x8x16xbf16>
    "tpu.trace_start"() <{level = 10 : i32, message = "btn,bnd->btd"}> : () -> ()
    %cst_30 = arith.constant dense<0.000000e+00> : vector<1x8x128xf32>
    %50 = tpu.matmul %49, %17, %cst_30 {dimension_numbers = #tpu.dot_dimension_numbers<[2], [1], [1], [2], [0, 0, 0, 1, 1, 2], [0], [0]>} : vector<1x8x16xbf16>, vector<1x16x128xbf16>, vector<1x8x128xf32> -> vector<1x8x128xf32>
    "tpu.trace_stop"() : () -> ()
    %c0_31 = arith.constant 0 : index
    %c0_32 = arith.constant 0 : index
    %c0_33 = arith.constant 0 : index
    %51 = vector.load %arg12[%c0_31, %c0_32, %c0_33] : memref<1x8x128xf32, #tpu.memory_space<vmem>>, vector<1x8x128xf32>
    tpu.vector_store %arg12[%c0_31, %c0_32, %c0_33], %50 {strides = array<i32>} : memref<1x8x128xf32, #tpu.memory_space<vmem>>, vector<1x8x128xf32>,
    return
  }
  func.func @transform_0(%arg0: i32) -> (i32, i32, i32) {
    %c0_i32 = arith.constant 0 : i32
    %c0_i32_0 = arith.constant 0 : i32
    %c0_i32_1 = arith.constant 0 : i32
    return %arg0, %c0_i32, %c0_i32_0 : i32, i32, i32
  }
  func.func @transform_1(%arg0: i32) -> (i32, i32, i32) {
    %c0_i32 = arith.constant 0 : i32
    %c0_i32_0 = arith.constant 0 : i32
    %c0_i32_1 = arith.constant 0 : i32
    return %arg0, %c0_i32, %c0_i32_0 : i32, i32, i32
  }
  func.func @transform_2(%arg0: i32) -> (i32, i32) {
    %c0_i32 = arith.constant 0 : i32
    %c0_i32_0 = arith.constant 0 : i32
    %c0_i32_1 = arith.constant 0 : i32
    return %c0_i32, %c0_i32_0 : i32, i32
  }
  func.func @transform_3(%arg0: i32) -> (i32, i32) {
    %c0_i32 = arith.constant 0 : i32
    %c0_i32_0 = arith.constant 0 : i32
    %c0_i32_1 = arith.constant 0 : i32
    return %c0_i32, %c0_i32_0 : i32, i32
  }
  func.func @transform_4(%arg0: i32) -> (i32, i32) {
    %c0_i32 = arith.constant 0 : i32
    %c0_i32_0 = arith.constant 0 : i32
    %c0_i32_1 = arith.constant 0 : i32
    return %c0_i32, %c0_i32_0 : i32, i32
  }
  func.func @transform_5(%arg0: i32) -> (i32, i32) {
    %c0_i32 = arith.constant 0 : i32
    %c0_i32_0 = arith.constant 0 : i32
    %c0_i32_1 = arith.constant 0 : i32
    return %c0_i32, %c0_i32_0 : i32, i32
  }
  func.func @transform_6(%arg0: i32) -> (i32, i32) {
    %c0_i32 = arith.constant 0 : i32
    %c0_i32_0 = arith.constant 0 : i32
    %c0_i32_1 = arith.constant 0 : i32
    return %c0_i32, %c0_i32_0 : i32, i32
  }
  func.func @transform_7(%arg0: i32) -> (i32, i32) {
    %c0_i32 = arith.constant 0 : i32
    %c0_i32_0 = arith.constant 0 : i32
    %c0_i32_1 = arith.constant 0 : i32
    return %c0_i32, %c0_i32_0 : i32, i32
  }
  func.func @transform_8(%arg0: i32) -> (i32, i32) {
    %c0_i32 = arith.constant 0 : i32
    %c0_i32_0 = arith.constant 0 : i32
    %c0_i32_1 = arith.constant 0 : i32
    return %c0_i32, %c0_i32_0 : i32, i32
  }
  func.func @transform_9(%arg0: i32) -> (i32, i32) {
    %c0_i32 = arith.constant 0 : i32
    %c0_i32_0 = arith.constant 0 : i32
    %c0_i32_1 = arith.constant 0 : i32
    return %c0_i32, %c0_i32_0 : i32, i32
  }
  func.func @transform_10(%arg0: i32) -> (i32, i32) {
    %c0_i32 = arith.constant 0 : i32
    %c0_i32_0 = arith.constant 0 : i32
    %c0_i32_1 = arith.constant 0 : i32
    return %c0_i32, %c0_i32_0 : i32, i32
  }
  func.func @transform_11(%arg0: i32) -> (i32, i32, i32) {
    %c0_i32 = arith.constant 0 : i32
    %c0_i32_0 = arith.constant 0 : i32
    %c0_i32_1 = arith.constant 0 : i32
    return %arg0, %c0_i32, %c0_i32_0 : i32, i32, i32
  }
}

</mosaic_0001>

<bundles_post_ra>
// kernel: tpu_custom_call.1
= control target key start
LH: loop header
LB: loop body
LE: loop exit
PB: predicated region body
PF: predicated region fallthrough
CT: control target
= control target key end

     0   :  { %s1835_s0 = inlined_call_operand.hbm [shape: bf16[2,8,32], index: 0, kind: input, shape index: {}]   ;;  %s1836_s1 = inlined_call_operand.hbm [shape: bf16[2,16,32], index: 1, kind: input, shape index: {}]   ;;  %s1837_s2 = inlined_call_operand.hbm [shape: bf16[32,32], index: 2, kind: input, shape index: {}]   ;;  %s1838_s3 = inlined_call_operand.hbm [shape: f32[1,32], index: 3, kind: input, shape index: {}]   ;;  %s1839_s4 = inlined_call_operand.hbm [shape: bf16[32,128], index: 4, kind: input, shape index: {}]   ;;  %s1840_s5 = inlined_call_operand.hbm [shape: f32[1,128], index: 5, kind: input, shape index: {}]   ;;  %s1841_s6 = inlined_call_operand.hbm [shape: bf16[32,32], index: 6, kind: input, shape index: {}]   ;;  %s1842_s7 = inlined_call_operand.hbm [shape: f32[8,32], index: 7, kind: input, shape index: {}]   ;;  %s1843_s8 = inlined_call_operand.vmem [shape: bf16[8,16], index: 8, kind: input, shape index: {}]   ;;  %s1844_s9 = inlined_call_operand.hbm [shape: f32[1,16], index: 9, kind: input, shape index: {}]   ;;  %s1845_s10 = inlined_call_operand.vmem [shape: bf16[8,16], index: 10, kind: input, shape index: {}]   ;;  %s1846_s11 = inlined_call_operand.hbm [shape: f32[2,8,128], index: 11, kind: output, shape index: {}]  }
   0x1   :  { %1850 = sst [smem:[#allocation26_spill]] %s1837_s2 }
   0x2   :  { %1851 = sst [smem:[#allocation27_spill]] %s1838_s3 }
   0x3   :  { %1852 = sst [smem:[#allocation28_spill]] %s1839_s4 }
   0x4   :  { %1853 = sst [smem:[#allocation29_spill]] %s1840_s5 }
   0x5   :  { %1854 = sst [smem:[#allocation30_spill]] %s1841_s6 }
   0x6   :  { %1855 = sst [smem:[#allocation31_spill]] %s1842_s7 }
   0x7   :  { %1856 = sst [smem:[#allocation32_spill]] %s1844_s9 }
   0x8   :  { %1857 = sst [smem:[#allocation33_spill]] %s1846_s11 }
   0x9   :  { %16 = vsyncpa [#allocation3], 0 }
   0xa   :  { %18 = vsyncpa [#allocation3 + $0x1], 0 }
   0xb   :  { %19 = vsyncpa [#allocation6], 0 }
   0xc   :  { %21 = vsyncpa [#allocation6 + $0x1], 0 }
   0xd   :  { %22 = vsyncpa [#allocation9], 0 }
   0xe   :  { %23 = vsyncpa [#allocation12], 0 }
   0xf   :  { %24 = vsyncpa [#allocation15], 0 }
  0x10   :  { %25 = vsyncpa [#allocation4], 0 }
  0x11   :  { %27 = vsyncpa [#allocation4 + $0x1], 0  ;;  %s1581_s17 = smov 0   ;;  %s1583_s18 = smov 0  }
  0x12   :  { %s1585_s19 = smov 0   ;;  %s1587_s20 = smov 0  }
  0x13 LB: > { %s1858_s2 = sld [smem:[#allocation26_spill]]  ;;  %s1605_s24 = sadd.s32 4294967295, %s1510_s20   ;;  %s1510_s20 = sphi %s1587_s20, %s1881_s20   ;;  %s1506_s19 = sphi %s1585_s19, %s1880_s19   ;;  %s1502_s18 = sphi %s1583_s18, %s1879_s18   ;;  %s1498_s17 = sphi %s1581_s17, %s1878_s17  }
  0x14   : > { %p951_p0 = scmp.ge.s32.totalorder %s1510_s20, 1  ;;  %p54_p1 = scmp.eq.s32.totalorder %s1605_s24, 0 }
  0x15   : > { %p305_p2 = scmp.lt.s32.totalorder %s1510_s20, 3  ;;  %s1512_s26 = smov [#allocation7]  }
  0x16   : > { %s318_s27 = sshll.u32 %s1512_s26, 4  ;;  %s1860_s3 = sld [smem:[#allocation27_spill]]  ;;  %s319_s27 = int_to_ptr.vmem [resolvable:$true] %s318_s27 }
  0x17   : > { %p1610_p3 = pnand %p951_p0, %p305_p2  ;;  %s1862_s5 = sld [smem:[#allocation29_spill]] }
  0x18   : > { %s1513_s16 = smov [#allocation8]   ;;  %s1848_s22 = smov 64  }
  0x19   : > { %s316_s23 = sshll.u32 %s1858_s2, 4  ;;  %p1057_p4 = pneg %p1610_p3  ;;  %s317_s23 = int_to_ptr.hbm [resolvable:$true] %s316_s23 }
  0x1a   : > { %s333_s21 = sshll.u32 %s1513_s16, 4  ;;  %s1849_s26 = smov 4   ;;  %s334_s21 = int_to_ptr.vmem [resolvable:$true] %s333_s21 }
  0x1b   : > { %p1622_p6 = pnand %p1057_p4, %p54_p1  ;;  %s1863_s7 = sld [smem:[#allocation31_spill]] }
  0x1c   : > { %s331_s30 = sshll.u32 %s1860_s3, 4  ;;  %s1516_s13 = smov [#allocation11]   ;;  %s332_s30 = int_to_ptr.hbm [resolvable:$true] %s331_s30 }
  0x1d   : > { %s357_s15 = sshll.u32 %s1862_s5, 4  ;;  %s359_s14 = sshll.u32 %s1516_s13, 4  ;;  %s358_s15 = int_to_ptr.hbm [resolvable:$true] %s357_s15  ;;  %s360_s14 = int_to_ptr.vmem [resolvable:$true] %s359_s14 }
  0x1e   : > { %1060 = dma.hbm_to_vmem [thread:$0]  (!%p1622_p6), %s317_s23, 256, %s319_s27, [#allocation6], %s1848_s22, %s1848_s22, %s1849_s26  }
  0x1f   : > { %1063 = dma.hbm_to_vmem [thread:$0]  (!%p1622_p6), %s332_s30, 16, %s334_s21, [#allocation9]  }
  0x20   : > { %1069 = dma.hbm_to_vmem [thread:$0]  (!%p1622_p6), %s358_s15, 16, %s360_s14, [#allocation12]  }
  0x21   : > { %s383_s2 = sshll.u32 %s1863_s7, 4  ;;  %s1517_s16 = smov [#allocation14]   ;;  %s384_s2 = int_to_ptr.hbm [resolvable:$true] %s383_s2 }
  0x22   : > { %s385_s3 = sshll.u32 %s1517_s16, 4  ;;  %s1864_s4 = sld [smem:[#allocation28_spill]]  ;;  %s386_s3 = int_to_ptr.vmem [resolvable:$true] %s385_s3 }
  0x23   : > { %1075 = dma.hbm_to_vmem [thread:$0]  (!%p1622_p6), %s384_s2, 128, %s386_s3, [#allocation15]  }
  0x24   : > { %s1865_s6 = sld [smem:[#allocation30_spill]]  ;;  %s1518_s28 = smov [#allocation10]  }
  0x25   : > { %s344_s15 = sshll.u32 %s1518_s28, 4  ;;  %s1519_s2 = smov [#allocation13]   ;;  %s345_s15 = int_to_ptr.vmem [resolvable:$true] %s344_s15 }
  0x26   : > { %s370_s3 = sshll.u32 %s1519_s2, 4  ;;  %s1866_s9 = sld [smem:[#allocation32_spill]]  ;;  %s371_s3 = int_to_ptr.vmem [resolvable:$true] %s370_s3 }
  0x27   : > { %s1520_s13 = smov [#allocation16]   ;;  %s950_s16 = sadd.s32 4294967294, %s1510_s20  }
  0x28   : > { %s342_s23 = sshll.u32 %s1864_s4, 4  ;;  %s400_s14 = sshll.u32 %s1520_s13, 4  ;;  %s343_s23 = int_to_ptr.hbm [resolvable:$true] %s342_s23  ;;  %s401_s14 = int_to_ptr.vmem [resolvable:$true] %s400_s14 }
  0x29   : > { %1066 = dma.hbm_to_vmem [thread:$0]  (!%p1622_p6), %s343_s23, 256, %s345_s15, [#allocation9], %s1848_s22, %s1848_s22, %s1849_s26  }
  0x2a   : > { %s368_s21 = sshll.u32 %s1865_s6, 4  ;;  %s1666_s23 = sadd.s32 1, %s1510_s20   ;;  %s369_s21 = int_to_ptr.hbm [resolvable:$true] %s368_s21 }
  0x2b   : > { %1072 = dma.hbm_to_vmem [thread:$0]  (!%p1622_p6), %s369_s21, 256, %s371_s3, [#allocation12], %s1848_s22, %s1848_s22, %s1849_s26  }
  0x2c   : > { %s398_s29 = sshll.u32 %s1866_s9, 4  ;;  %s40_s27 = sadd.s32 1, %s1506_s19  ;;  %s399_s29 = int_to_ptr.hbm [resolvable:$true] %s398_s29 }
  0x2d   : > { %1078 = dma.hbm_to_vmem [thread:$0]  (!%p1622_p6), %s399_s29, 16, %s401_s14, [#allocation15]  }
  0x2e   : > { %s37_s30 = ssub.s32 %s1510_s20, %s1666_s23  ;;  %p47_p7 = scmp.ne.s32.totalorder %s1506_s19, %s1502_s18 }
  0x2f   : > { %p38_p8 = scmp.eq.s32.totalorder %s37_s30, 0  ;;  %p48_p9 = scmp.eq.s32.totalorder %s1510_s20, 0 }
  0x30   : > { %p53_p10 = scmp.ne.s32.totalorder %s1502_s18, %s1498_s17  ;;  %p292_p11 = scmp.eq.s32.totalorder %s1605_s24, 1 }
  0x31   : > { %s1678_s21 = scalar_select %p38_p8, %s1506_s19, %s40_s27  }
  0x32   : > { %p1680_p12 = por %p48_p9, %p47_p7  ;;  %p1686_p13 = por %p54_p1, %p53_p10 }
  0x33   : > { %1867 = sst [smem:[#allocation25_spill]] %s1678_s21  ;;  %p1690_p0 = por %p292_p11, %p47_p7 }
  0x34   : > { %p298_p2 = scmp.eq.s32.totalorder %s950_s16, 1  ;;  %p1097_p4 = scmp.lt.s32.totalorder %s1510_s20, 2 }
  0x35   : > { %s1696_s2 = sand.u32 1, %s1506_s19   ;;  %s961_s11 = sshll.u32 %s1510_s20, 2 }
  0x36   : > { %p1698_p6 = por %p298_p2, %p53_p10  ;;  %s960_s5 = sshll.u32 %s1696_s2, 2 }
  0x37   : > { %s422_s14 = scalar_lea.hbm %s1835_s0, %s961_s11  ;;  %s418_s30 = scalar_lea.vmem [#allocation2], %s960_s5 }
  0x38   : > { %s424_s27 = sshll.u32 %s422_s14, 4  ;;  %s426_s22 = sshll.u32 %s418_s30, 4  ;;  %s425_s27 = int_to_ptr.hbm [resolvable:$true] %s424_s27  ;;  %s427_s22 = int_to_ptr.vmem [resolvable:$true] %s426_s22 }
  0x39   : > { %p1709_p7 = pnand %p1097_p4, %p1680_p12  ;;  %s962_s26 = sshll.u32 %s1696_s2, 3 }
  0x3a   : > { %s433_s4 = sand.u32 1, %s1510_s20   ;;  %s437_s6 = scalar_lea.vmem [#allocation5], %s962_s26 }
  0x3b   : > { %s445_s7 = sshll.u32 %s437_s6, 4  ;;  %s415_s9 = scalar_lea.sflag [#allocation3], %s1696_s2  ;;  %s446_s7 = int_to_ptr.vmem [resolvable:$true] %s445_s7 }
  0x3c   : > { %s1364_s21 = sshra.s32 %s425_s27, 4  ;;  %p1368_p9 = pneg %p1709_p7  ;;  %s1365_s21 = int_to_ptr.hbm [resolvable:$true] %s1364_s21 }
  0x3d   : > { %s1366_s11 = scalar_lea.hbm %s1365_s21, 4  ;;  %s1371_s29 = scalar_lea.hbm %s1835_s0, 8 }
  0x3e   : > { %p1367_p8 = scmp.ne.s32.totalorder %s1365_s21, %s1366_s11  ;;  %p1372_p12 = scmp.lt.s32.totalorder %s1365_s21, %s1835_s0 }
  0x3f   : > { %p1373_p2 = scmp.lt.s32.totalorder %s1371_s29, %s1366_s11 }
  0x40   : > { %p1369_p10 = pnand %p1368_p9, %p1367_p8 }
  0x41   : > { %p1374_p4 = por %p1373_p2, %p1372_p12 }
  0x42   : > { %p1370_p11 = pneg %p1369_p10 }
  0x44   : > { %p1375_p5 = pnand %p1374_p4, %p1370_p11 }
  0x46   : > { %1378 = shalt.err (!%p1375_p5)
}
  0x47   : > { %1082 = dma.hbm_to_vmem [thread:$0]  (!%p1709_p7), %s425_s27, 64, %s427_s22, %s415_s9  }
  0x48   : > { %s1015_s6 = sshll.u32 %s1510_s20, 3  ;;  %s434_s5 = scalar_lea.sflag [#allocation6], %s433_s4 }
  0x49   : > { %s442_s30 = scalar_lea.hbm %s1836_s1, %s1015_s6  ;;  %s1401_s9 = scalar_lea.hbm %s1836_s1, 16 }
  0x4a   : > { %s443_s28 = sshll.u32 %s442_s30, 4  ;;  %s444_s28 = int_to_ptr.hbm [resolvable:$true] %s443_s28 }
  0x4b   : > { %s1394_s13 = sshra.s32 %s444_s28, 4  ;;  %s1395_s13 = int_to_ptr.hbm [resolvable:$true] %s1394_s13 }
  0x4c   : > { %s1396_s21 = scalar_lea.hbm %s1395_s13, 8  ;;  %p1402_p11 = scmp.lt.s32.totalorder %s1395_s13, %s1836_s1 }
  0x4d   : > { %p1397_p8 = scmp.ne.s32.totalorder %s1395_s13, %s1396_s21  ;;  %p1403_p12 = scmp.lt.s32.totalorder %s1401_s9, %s1396_s21 }
  0x4f   : > { %p1399_p5 = pnand %p1397_p8, %p1368_p9  ;;  %p1404_p2 = por %p1403_p12, %p1402_p11 }
  0x51   : > { %p1400_p10 = pneg %p1399_p5 }
  0x53   : > { %p1405_p4 = pnand %p1404_p2, %p1400_p10 }
  0x55   : > { %1408 = shalt.err (!%p1405_p4)
}
  0x56   : > { %s1873_s4 = smov 4   ;;  %s1874_s14 = smov 64  }
  0x57   : > { %1085 = dma.hbm_to_vmem [thread:$0]  (!%p1709_p7), %s444_s28, 128, %s446_s7, %s434_s5, %s1874_s14, %s1874_s14, %s1873_s4  }
  0x58   : > { %457 = sbr.rel (%p1610_p3) target bundleno = 1039 (0x40f), region = 64  ;;  %s1750_s6 = sand.u32 (!%p1610_p3), 1, %s1502_s18  }
  0x59   : > { %s966_s26 = sshll.u32 (!%p1610_p3), %s1750_s6, 2  ;;  %s460_s2 = scalar_lea.sflag (!%p1610_p3), [#allocation3], %s1750_s6 }
  0x5a   : > { %s1754_s30 = scalar_lea.vmem (!%p1610_p3), [#allocation2], %s966_s26 }
  0x5d   : > { %1469 = dma.done.wait (%p1686_p13), %s460_s2, 64  }
  0x5e   : > { %1471 = vsyncadd (%p1686_p13), %s460_s2, 4294967232  ;;  %s469_s7 = sand.u32 1, %s1605_s24   ;;  %s967_s25 = sshll.u32 %s1750_s6, 3 }
  0x5f   : > { %s470_s16 = scalar_lea.sflag [#allocation6], %s469_s7  ;;  %s473_s28 = scalar_lea.vmem [#allocation5], %s967_s25 }
  0x60   : > { %1473 = dma.done.wait (%p1686_p13), %s470_s16, 128  }
  0x61   : > { %1475 = vsyncadd (%p1686_p13), %s470_s16, 4294967168 }
  0x62   : > { %1477 = dma.done.wait (%p54_p1), [#allocation6], 256  }
  0x63   : > { %1479 = vsyncadd (%p54_p1), [#allocation6], 4294967040 }
  0x64   : > { %1481 = dma.done.wait (%p54_p1), [#allocation9], 272  }
  0x65   : > { %1483 = vsyncadd (%p54_p1), [#allocation9], 4294967024 }
  0x66   : > { %1485 = dma.done.wait (%p54_p1), [#allocation12], 272  }
  0x67   : > { %1487 = vsyncadd (%p54_p1), [#allocation12], 4294967024 }
  0x68   : > { %1489 = dma.done.wait (%p54_p1), [#allocation15], 144  }
  0x69   : > { %1491 = vsyncadd (%p54_p1), [#allocation15], 4294967152  ;;  %v1016_v0 = vld [vmem:[%s473_s28] sm:$0xff]  ;;  %v639_v2 = vld [vmem:[%s1845_s10] sm:$0xf]  ;;  %vm641_vm0 = vcmask 130048  }
  0x6a   : > { %v1022_v1 = vld [vmem:[#allocation13 + $0x8] sm:$0xff]  ;;  %652 = vmatpush.bf16.msra.mxu2 %v1016_v0  ;;  %v1021_v3 = vld [vmem:[#allocation13] sm:$0xff]  ;;  %vm577_vm1 = vcmask 261120   ;;  %vm723_vm2 = vcmask 1043456   ;;  %v691_v14 = vld [vmem:[#allocation14] sm:$0xff]  ;;  %vm719_vm3 = vcmask 64512  }
  0x6b   : > { %684 = vmatpush.bf16.msra.mxu3 %v1022_v1  ;;  %v1018_v4 = vld [vmem:[#allocation7 + $0x8] sm:$0xff]  ;;  %v1017_v5 = vld [vmem:[#allocation7] sm:$0xff]  ;;  %v1147_v17 = vld [vmem:[#allocation8] ss:$0 sm:$0xff]  ;;  %s1012_s11 = sshll.u32 %s1605_s24, 3  ;;  %s1875_s22 = sld [smem:[#allocation33_spill]] }
  0x6c   : > { %587 = vmatpush.bf16.msra.mxu0 %v1018_v4  ;;  %v554_v6 = vld [vmem:[%s1754_s30] sm:$0xf]  ;;  %v1020_v26 = vld [vmem:[#allocation10 + $0x8] sm:$0xff]  ;;  %v1019_v27 = vld [vmem:[#allocation10] sm:$0xff]  ;;  %s552_s4 = scalar_lea.vmem [#allocation17], %s967_s25  ;;  %s776_s2 = scalar_lea.sflag [#allocation4], %s1750_s6 }
  0x6d   : > { %998 = vmatmul.msk.bf16.vlgmr.msra.gmra.mxu2 %vm641_vm0, %v639_v2  ;;  %v714_v12 = vld [vmem:[%s1843_s8] sm:$0xf]  ;;  %629 = vmatpush.bf16.msra.mxu1 %v1020_v26  ;;  %v1148_v28 = vld [vmem:[#allocation16] ss:$0 sm:$0xff]  ;;  %v1149_v33 = vld [vmem:[#allocation11] ss:$0 sm:$0xff] }
  0x6e   : > { %v725_v13 = vsel %vm723_vm2, %v714_v12, 0  ;;  %s788_s14 = sshll.u32 %s552_s4, 4  ;;  %s789_s14 = int_to_ptr.vmem [resolvable:$true] %s788_s14 }
  0x6f   : > { %685 = vmatpush.bf16.msra.mxu3 %v1021_v3 }
  0x70   : > { %588 = vmatpush.bf16.msra.mxu0 %v1017_v5 }
  0x71   : > { %630 = vmatpush.bf16.msra.mxu1 %v1019_v27  ;;  %s786_s27 = scalar_lea.hbm %s1875_s22, %s1012_s11  ;;  %s1444_s28 = scalar_lea.hbm %s1875_s22, 16 }
  0x72   : > { %s790_s26 = sshll.u32 %s786_s27, 4  ;;  %s791_s26 = int_to_ptr.hbm [resolvable:$true] %s790_s26 }
  0x73   : > { %984 = vmatmul.msk.bf16.vlgmr.msra.gmra.mxu0 %vm577_vm1, %v554_v6  ;;  %s1438_s30 = sshra.s32 %s791_s26, 4  ;;  %s1439_s30 = int_to_ptr.hbm [resolvable:$true] %s1438_s30 }
  0x74   : > { %734 = vmatpush.bf16.msrb.mxu0 %v725_v13  ;;  %997 = vmatmul.msk.bf16.vlgmr.msra.gmra.mxu1 %vm577_vm1, %v1016_v0  ;;  %s1440_s7 = scalar_lea.hbm %s1439_s30, 8  ;;  %p1445_p7 = scmp.lt.s32.totalorder %s1439_s30, %s1875_s22 }
  0x75   : > { %p1441_p1 = scmp.ne.s32.totalorder %s1439_s30, %s1440_s7  ;;  %p1446_p9 = scmp.lt.s32.totalorder %s1444_s28, %s1440_s7 }
  0x77   : > { %p1442_p3 = pnand %p1441_p1, %p1690_p0  ;;  %p1447_p8 = por %p1446_p9, %p1445_p7 }
  0x79   : > { %p1443_p13 = pneg %p1442_p3 }
  0x7b   : > { %p1448_p5 = pnand %p1447_p8, %p1443_p13 }
  0xf0   : > { %v654_v7 = vpop.f32.mrf.mxu2  ;;  %v590_v10 = vpop.f32.mrf.mxu0 }
  0xf1   : > { %v658_v8 = vpack.c.bf16 %v654_v7, %v654_v7  ;;  %v591_v20 = vadd.f32 %v1147_v17, %v590_v10  ;;  %v632_v34 = vpop.f32.mrf.mxu1 }
  0xf2   : > { %v633_v35 = vadd.f32 %v1149_v33, %v632_v34 }
  0xf3   : > { %1007 = vmatmul.msk.bf16.vlgmr.msra.gmra.mxu3 %vm577_vm1, %v658_v8  ;;  %v594_v22 = vpack.c.bf16 %v591_v20, %v591_v20 }
  0xf4   : > { %v637_v36 = vpack.c.bf16 %v633_v35, %v633_v35 }
  0xf6   : > { %v754_v41 = vunpack.c.l.b16 %v637_v36 }
  0xf8   : > { %v656_v9 = vpop.f32.mrf.mxu2  ;;  %v592_v11 = vpop.f32.mrf.mxu0 }
  0xf9   : > { %v634_v37 = vpop.f32.mrf.mxu1 }
  0xfa   : > { %v635_v39 = vadd.f32 %v1149_v33, %v634_v37 }
  0xfc   : > { %v638_v42 = vpack.c.bf16 %v635_v39, %v635_v39 }
  0xfe   : > { %v755_v44 = vunpack.c.l.b16 %v638_v42 }
 0x100   : > { %v756_v45 = vpack.c.b16 %v755_v44, %v754_v41 }
 0x102   : > { %768 = vmatpush.bf16.msrb.mxu1 %v756_v45 }
 0x176   : > { %v687_v15 = vpop.f32.mrf.mxu3 }
 0x177   : > { %v692_v16 = vadd.f32 %v691_v14, %v687_v15 }
 0x179   : > { %v693_v18 = vpack.c.bf16 %v692_v16, %v692_v16 }
 0x17b   : > { %v698_v19 = vsel %vm577_vm1, %v693_v18, 0 }
 0x17c   : > { %707 = vmatpush.bf16.xpose.msrb.mxu2 %v698_v19 }
 0x17e   : > { %v689_v21 = vpop.f32.mrf.mxu3 }
 0x183   : > { %1008 = vmatmul.msk.bf16.vlgmr.msrb.gmra.mxu2 %vm577_vm1, %v594_v22 }
 0x206   : > { %v709_v23 = vpop.f32.mrf.mxu2 }
 0x207   : > { %v713_v24 = vpack.c.bf16 %v709_v23, %v709_v23 }
 0x209   : > { %1009 = vmatmul.msk.bf16.vlgmr.msrb.gmra.mxu0 %vm719_vm3, %v713_v24 }
 0x20e   : > { %v711_v25 = vpop.f32.mrf.mxu2 }
 0x286   : > { %v736_v29 = vpop.f32.mrf.mxu0 }
 0x287   : > { %v737_v30 = vadd.f32 %v1148_v28, %v736_v29 }
 0x289   : > { %v740_v31 = vsel %vm641_vm0, %v737_v30, -inf }
 0x28a   : > { %741 = vmax.xlane.f32.xlu0 %v740_v31 }
 0x28e   : > { %v738_v32 = vpop.f32.mrf.mxu0 }
 0x2fd   : > { %v742_v38 = vpop.xlane.xlu0 %741 }
 0x2fe   : > { %v743_v40 = vsub.f32 %v737_v30, %v742_v38 }
 0x300   : > { %v744_v43 = vmul.f32 1.442695, %v743_v40 }
 0x302   : > { %1150 = vpow2.f32 %v744_v43 }
 0x308   : > { %v1151_v46 = vpop.eup %1150 }
 0x309   : > { %v746_v47 = vsel %vm641_vm0, %v1151_v46, 0.0 }
 0x30a   : > { %747 = vadd.xlane.f32.xlu0 %v746_v47 }
 0x37d   : > { %v748_v48 = vpop.xlane.xlu0 %747 }
 0x37e   : > { %1152 = vrcp.f32 %v748_v48 }
 0x384   : > { %v1153_v49 = vpop.eup %1152 }
 0x385   : > { %v750_v50 = vmul.f32 %v1153_v49, %v1151_v46 }
 0x387   : > { %v751_v51 = vpack.c.bf16 %v750_v50, %v750_v50 }
 0x389   : > { %1010 = vmatmul.msk.bf16.vlgmr.msrb.gmra.mxu1 %vm641_vm0, %v751_v51 }
 0x406   : > { %v770_v52 = vpop.f32.mrf.mxu1 }
 0x407   : > { %774 = vst [vmem:[%s552_s4] sm:$0xff] %v770_v52 }
 0x408   : > { %1451 = shalt.err (!%p1448_p5)
}
 0x409   : > { %1055 = dma.vmem_to_hbm [thread:$0]  (%p1690_p0), %s789_s14, 128, %s791_s26, %s776_s2  }
 0x40e   : > { %v772_v53 = vpop.f32.mrf.mxu1 }
 0x40f PF: > { %s802_s6 = sand.u32 1, %s1498_s17   ;;  %p1876_p10 = scmp.ge.s32.totalorder %s1510_s20, 2 }
 0x410   : > { %s803_s5 = scalar_lea.sflag [#allocation4], %s802_s6 }
 0x411   : > { %p1087_p11 = pnand %p1876_p10, %p1698_p6 }
 0x413   : > { %p1088_p12 = pneg %p1087_p11 }
 0x415   : > { %1493 = dma.done.wait (%p1088_p12), %s803_s5, 128  }
 0x416   : > { %1495 = vsyncadd (%p1088_p12), %s803_s5, 4294967168  ;;  %s1877_s13 = sld [smem:[#allocation25_spill]]  ;;  %p30_p2 = scmp.ge.s32.totalorder %s1666_s23, 4  }
 0x417   : > { %s1878_s17 = smov %s1502_s18  ;;  %s1879_s18 = smov %s1506_s19 }
 0x418   : > { %s1881_s20 = smov %s1666_s23  ;;  %32 = sbr.rel (!%p30_p2) target bundleno = 19 (0x13), region = 150 }
 0x41c   : > { %s1880_s19 = smov %s1877_s13 }
 0x41d   :  { %809 = vsyncpa [#allocation3], 1 }
 0x41e   :  { %811 = vsyncpa [#allocation3 + $0x1], 1 }
 0x41f   :  { %812 = vsyncpa [#allocation6], 1 }
 0x420   :  { %814 = vsyncpa [#allocation6 + $0x1], 1 }
 0x421   :  { %815 = vsyncpa [#allocation9], 1 }
 0x422   :  { %816 = vsyncpa [#allocation12], 1 }
 0x423   :  { %817 = vsyncpa [#allocation15], 1 }
 0x424   :  { %818 = vsyncpa [#allocation4], 1 }
 0x425   :  { %820 = vsyncpa [#allocation4 + $0x1], 1 }

// kernel: tpu_custom_call.1
= control target key start
LH: loop header
LB: loop body
LE: loop exit
PB: predicated region body
PF: predicated region fallthrough
CT: control target
= control target key end

     0   :  { %s1835_s0 = inlined_call_operand.hbm [shape: bf16[2,8,32], index: 0, kind: input, shape index: {}]   ;;  %s1836_s1 = inlined_call_operand.hbm [shape: bf16[2,16,32], index: 1, kind: input, shape index: {}]   ;;  %s1837_s2 = inlined_call_operand.hbm [shape: bf16[32,32], index: 2, kind: input, shape index: {}]   ;;  %s1838_s3 = inlined_call_operand.hbm [shape: f32[1,32], index: 3, kind: input, shape index: {}]   ;;  %s1839_s4 = inlined_call_operand.hbm [shape: bf16[32,128], index: 4, kind: input, shape index: {}]   ;;  %s1840_s5 = inlined_call_operand.hbm [shape: f32[1,128], index: 5, kind: input, shape index: {}]   ;;  %s1841_s6 = inlined_call_operand.hbm [shape: bf16[32,32], index: 6, kind: input, shape index: {}]   ;;  %s1842_s7 = inlined_call_operand.hbm [shape: f32[8,32], index: 7, kind: input, shape index: {}]   ;;  %s1843_s8 = inlined_call_operand.vmem [shape: bf16[8,16], index: 8, kind: input, shape index: {}]   ;;  %s1844_s9 = inlined_call_operand.hbm [shape: f32[1,16], index: 9, kind: input, shape index: {}]   ;;  %s1845_s10 = inlined_call_operand.vmem [shape: bf16[8,16], index: 10, kind: input, shape index: {}]   ;;  %s1846_s11 = inlined_call_operand.hbm [shape: f32[2,8,128], index: 11, kind: output, shape index: {}]  }
   0x1   :  { %1850 = sst [smem:[#allocation26_spill]] %s1837_s2 }
   0x2   :  { %1851 = sst [smem:[#allocation27_spill]] %s1838_s3 }
   0x3   :  { %1852 = sst [smem:[#allocation28_spill]] %s1839_s4 }
   0x4   :  { %1853 = sst [smem:[#allocation29_spill]] %s1840_s5 }
   0x5   :  { %1854 = sst [smem:[#allocation30_spill]] %s1841_s6 }
   0x6   :  { %1855 = sst [smem:[#allocation31_spill]] %s1842_s7 }
   0x7   :  { %1856 = sst [smem:[#allocation32_spill]] %s1844_s9 }
   0x8   :  { %1857 = sst [smem:[#allocation33_spill]] %s1846_s11 }
   0x9   :  { %16 = vsyncpa [#allocation3], 0 }
   0xa   :  { %18 = vsyncpa [#allocation3 + $0x1], 0 }
   0xb   :  { %19 = vsyncpa [#allocation6], 0 }
   0xc   :  { %21 = vsyncpa [#allocation6 + $0x1], 0 }
   0xd   :  { %22 = vsyncpa [#allocation9], 0 }
   0xe   :  { %23 = vsyncpa [#allocation12], 0 }
   0xf   :  { %24 = vsyncpa [#allocation15], 0 }
  0x10   :  { %25 = vsyncpa [#allocation4], 0 }
  0x11   :  { %27 = vsyncpa [#allocation4 + $0x1], 0  ;;  %s1581_s17 = smov 0   ;;  %s1583_s18 = smov 0  }
  0x12   :  { %s1585_s19 = smov 0   ;;  %s1587_s20 = smov 0  }
  0x13 LB: > { %s1858_s2 = sld [smem:[#allocation26_spill]]  ;;  %s1605_s24 = sadd.s32 4294967295, %s1510_s20   ;;  %s1510_s20 = sphi %s1587_s20, %s1881_s20   ;;  %s1506_s19 = sphi %s1585_s19, %s1880_s19   ;;  %s1502_s18 = sphi %s1583_s18, %s1879_s18   ;;  %s1498_s17 = sphi %s1581_s17, %s1878_s17  }
  0x14   : > { %p951_p0 = scmp.ge.s32.totalorder %s1510_s20, 1  ;;  %p54_p1 = scmp.eq.s32.totalorder %s1605_s24, 0 }
  0x15   : > { %p305_p2 = scmp.lt.s32.totalorder %s1510_s20, 3  ;;  %s1512_s26 = smov [#allocation7]  }
  0x16   : > { %s318_s27 = sshll.u32 %s1512_s26, 4  ;;  %s1860_s3 = sld [smem:[#allocation27_spill]]  ;;  %s319_s27 = int_to_ptr.vmem [resolvable:$true] %s318_s27 }
  0x17   : > { %p1610_p3 = pnand %p951_p0, %p305_p2  ;;  %s1862_s5 = sld [smem:[#allocation29_spill]] }
  0x18   : > { %s1513_s16 = smov [#allocation8]   ;;  %s1848_s22 = smov 64  }
  0x19   : > { %s316_s23 = sshll.u32 %s1858_s2, 4  ;;  %p1057_p4 = pneg %p1610_p3  ;;  %s317_s23 = int_to_ptr.hbm [resolvable:$true] %s316_s23 }
  0x1a   : > { %s333_s21 = sshll.u32 %s1513_s16, 4  ;;  %s1849_s26 = smov 4   ;;  %s334_s21 = int_to_ptr.vmem [resolvable:$true] %s333_s21 }
  0x1b   : > { %p1622_p6 = pnand %p1057_p4, %p54_p1  ;;  %s1863_s7 = sld [smem:[#allocation31_spill]] }
  0x1c   : > { %s331_s30 = sshll.u32 %s1860_s3, 4  ;;  %s1516_s13 = smov [#allocation11]   ;;  %s332_s30 = int_to_ptr.hbm [resolvable:$true] %s331_s30 }
  0x1d   : > { %s357_s15 = sshll.u32 %s1862_s5, 4  ;;  %s359_s14 = sshll.u32 %s1516_s13, 4  ;;  %s358_s15 = int_to_ptr.hbm [resolvable:$true] %s357_s15  ;;  %s360_s14 = int_to_ptr.vmem [resolvable:$true] %s359_s14 }
  0x1e   : > { %1060 = dma.hbm_to_vmem [thread:$0]  (!%p1622_p6), %s317_s23, 256, %s319_s27, [#allocation6], %s1848_s22, %s1848_s22, %s1849_s26  }
  0x1f   : > { %1063 = dma.hbm_to_vmem [thread:$0]  (!%p1622_p6), %s332_s30, 16, %s334_s21, [#allocation9]  }
  0x20   : > { %1069 = dma.hbm_to_vmem [thread:$0]  (!%p1622_p6), %s358_s15, 16, %s360_s14, [#allocation12]  }
  0x21   : > { %s383_s2 = sshll.u32 %s1863_s7, 4  ;;  %s1517_s16 = smov [#allocation14]   ;;  %s384_s2 = int_to_ptr.hbm [resolvable:$true] %s383_s2 }
  0x22   : > { %s385_s3 = sshll.u32 %s1517_s16, 4  ;;  %s1864_s4 = sld [smem:[#allocation28_spill]]  ;;  %s386_s3 = int_to_ptr.vmem [resolvable:$true] %s385_s3 }
  0x23   : > { %1075 = dma.hbm_to_vmem [thread:$0]  (!%p1622_p6), %s384_s2, 128, %s386_s3, [#allocation15]  }
  0x24   : > { %s1865_s6 = sld [smem:[#allocation30_spill]]  ;;  %s1518_s28 = smov [#allocation10]  }
  0x25   : > { %s344_s15 = sshll.u32 %s1518_s28, 4  ;;  %s1519_s2 = smov [#allocation13]   ;;  %s345_s15 = int_to_ptr.vmem [resolvable:$true] %s344_s15 }
  0x26   : > { %s370_s3 = sshll.u32 %s1519_s2, 4  ;;  %s1866_s9 = sld [smem:[#allocation32_spill]]  ;;  %s371_s3 = int_to_ptr.vmem [resolvable:$true] %s370_s3 }
  0x27   : > { %s1520_s13 = smov [#allocation16]   ;;  %s950_s16 = sadd.s32 4294967294, %s1510_s20  }
  0x28   : > { %s342_s23 = sshll.u32 %s1864_s4, 4  ;;  %s400_s14 = sshll.u32 %s1520_s13, 4  ;;  %s343_s23 = int_to_ptr.hbm [resolvable:$true] %s342_s23  ;;  %s401_s14 = int_to_ptr.vmem [resolvable:$true] %s400_s14 }
  0x29   : > { %1066 = dma.hbm_to_vmem [thread:$0]  (!%p1622_p6), %s343_s23, 256, %s345_s15, [#allocation9], %s1848_s22, %s1848_s22, %s1849_s26  }
  0x2a   : > { %s368_s21 = sshll.u32 %s1865_s6, 4  ;;  %s1666_s23 = sadd.s32 1, %s1510_s20   ;;  %s369_s21 = int_to_ptr.hbm [resolvable:$true] %s368_s21 }
  0x2b   : > { %1072 = dma.hbm_to_vmem [thread:$0]  (!%p1622_p6), %s369_s21, 256, %s371_s3, [#allocation12], %s1848_s22, %s1848_s22, %s1849_s26  }
  0x2c   : > { %s398_s29 = sshll.u32 %s1866_s9, 4  ;;  %s40_s27 = sadd.s32 1, %s1506_s19  ;;  %s399_s29 = int_to_ptr.hbm [resolvable:$true] %s398_s29 }
  0x2d   : > { %1078 = dma.hbm_to_vmem [thread:$0]  (!%p1622_p6), %s399_s29, 16, %s401_s14, [#allocation15]  }
  0x2e   : > { %s37_s30 = ssub.s32 %s1510_s20, %s1666_s23  ;;  %p47_p7 = scmp.ne.s32.totalorder %s1506_s19, %s1502_s18 }
  0x2f   : > { %p38_p8 = scmp.eq.s32.totalorder %s37_s30, 0  ;;  %p48_p9 = scmp.eq.s32.totalorder %s1510_s20, 0 }
  0x30   : > { %p53_p10 = scmp.ne.s32.totalorder %s1502_s18, %s1498_s17  ;;  %p292_p11 = scmp.eq.s32.totalorder %s1605_s24, 1 }
  0x31   : > { %s1678_s21 = scalar_select %p38_p8, %s1506_s19, %s40_s27  }
  0x32   : > { %p1680_p12 = por %p48_p9, %p47_p7  ;;  %p1686_p13 = por %p54_p1, %p53_p10 }
  0x33   : > { %1867 = sst [smem:[#allocation25_spill]] %s1678_s21  ;;  %p1690_p0 = por %p292_p11, %p47_p7 }
  0x34   : > { %p298_p2 = scmp.eq.s32.totalorder %s950_s16, 1  ;;  %p1097_p4 = scmp.lt.s32.totalorder %s1510_s20, 2 }
  0x35   : > { %s1696_s2 = sand.u32 1, %s1506_s19   ;;  %s961_s11 = sshll.u32 %s1510_s20, 2 }
  0x36   : > { %p1698_p6 = por %p298_p2, %p53_p10  ;;  %s960_s5 = sshll.u32 %s1696_s2, 2 }
  0x37   : > { %s422_s14 = scalar_lea.hbm %s1835_s0, %s961_s11  ;;  %s418_s30 = scalar_lea.vmem [#allocation2], %s960_s5 }
  0x38   : > { %s424_s27 = sshll.u32 %s422_s14, 4  ;;  %s426_s22 = sshll.u32 %s418_s30, 4  ;;  %s425_s27 = int_to_ptr.hbm [resolvable:$true] %s424_s27  ;;  %s427_s22 = int_to_ptr.vmem [resolvable:$true] %s426_s22 }
  0x39   : > { %p1709_p7 = pnand %p1097_p4, %p1680_p12  ;;  %s962_s26 = sshll.u32 %s1696_s2, 3 }
  0x3a   : > { %s433_s4 = sand.u32 1, %s1510_s20   ;;  %s437_s6 = scalar_lea.vmem [#allocation5], %s962_s26 }
  0x3b   : > { %s445_s7 = sshll.u32 %s437_s6, 4  ;;  %s415_s9 = scalar_lea.sflag [#allocation3], %s1696_s2  ;;  %s446_s7 = int_to_ptr.vmem [resolvable:$true] %s445_s7 }
  0x3c   : > { %s1364_s21 = sshra.s32 %s425_s27, 4  ;;  %p1368_p9 = pneg %p1709_p7  ;;  %s1365_s21 = int_to_ptr.hbm [resolvable:$true] %s1364_s21 }
  0x3d   : > { %s1366_s11 = scalar_lea.hbm %s1365_s21, 4  ;;  %s1371_s29 = scalar_lea.hbm %s1835_s0, 8 }
  0x3e   : > { %p1367_p8 = scmp.ne.s32.totalorder %s1365_s21, %s1366_s11  ;;  %p1372_p12 = scmp.lt.s32.totalorder %s1365_s21, %s1835_s0 }
  0x3f   : > { %p1373_p2 = scmp.lt.s32.totalorder %s1371_s29, %s1366_s11 }
  0x40   : > { %p1369_p10 = pnand %p1368_p9, %p1367_p8 }
  0x41   : > { %p1374_p4 = por %p1373_p2, %p1372_p12 }
  0x42   : > { %p1370_p11 = pneg %p1369_p10 }
  0x44   : > { %p1375_p5 = pnand %p1374_p4, %p1370_p11 }
  0x46   : > { %1378 = shalt.err (!%p1375_p5)
}
  0x47   : > { %1082 = dma.hbm_to_vmem [thread:$0]  (!%p1709_p7), %s425_s27, 64, %s427_s22, %s415_s9  }
  0x48   : > { %s1015_s6 = sshll.u32 %s1510_s20, 3  ;;  %s434_s5 = scalar_lea.sflag [#allocation6], %s433_s4 }
  0x49   : > { %s442_s30 = scalar_lea.hbm %s1836_s1, %s1015_s6  ;;  %s1401_s9 = scalar_lea.hbm %s1836_s1, 16 }
  0x4a   : > { %s443_s28 = sshll.u32 %s442_s30, 4  ;;  %s444_s28 = int_to_ptr.hbm [resolvable:$true] %s443_s28 }
  0x4b   : > { %s1394_s13 = sshra.s32 %s444_s28, 4  ;;  %s1395_s13 = int_to_ptr.hbm [resolvable:$true] %s1394_s13 }
  0x4c   : > { %s1396_s21 = scalar_lea.hbm %s1395_s13, 8  ;;  %p1402_p11 = scmp.lt.s32.totalorder %s1395_s13, %s1836_s1 }
  0x4d   : > { %p1397_p8 = scmp.ne.s32.totalorder %s1395_s13, %s1396_s21  ;;  %p1403_p12 = scmp.lt.s32.totalorder %s1401_s9, %s1396_s21 }
  0x4f   : > { %p1399_p5 = pnand %p1397_p8, %p1368_p9  ;;  %p1404_p2 = por %p1403_p12, %p1402_p11 }
  0x51   : > { %p1400_p10 = pneg %p1399_p5 }
  0x53   : > { %p1405_p4 = pnand %p1404_p2, %p1400_p10 }
  0x55   : > { %1408 = shalt.err (!%p1405_p4)
}
  0x56   : > { %s1873_s4 = smov 4   ;;  %s1874_s14 = smov 64  }
  0x57   : > { %1085 = dma.hbm_to_vmem [thread:$0]  (!%p1709_p7), %s444_s28, 128, %s446_s7, %s434_s5, %s1874_s14, %s1874_s14, %s1873_s4  }
  0x58   : > { %457 = sbr.rel (%p1610_p3) target bundleno = 1039 (0x40f), region = 64  ;;  %s1750_s6 = sand.u32 (!%p1610_p3), 1, %s1502_s18  }
  0x59   : > { %s966_s26 = sshll.u32 (!%p1610_p3), %s1750_s6, 2  ;;  %s460_s2 = scalar_lea.sflag (!%p1610_p3), [#allocation3], %s1750_s6 }
  0x5a   : > { %s1754_s30 = scalar_lea.vmem (!%p1610_p3), [#allocation2], %s966_s26 }
  0x5d   : > { %1469 = dma.done.wait (%p1686_p13), %s460_s2, 64  }
  0x5e   : > { %1471 = vsyncadd (%p1686_p13), %s460_s2, 4294967232  ;;  %s469_s7 = sand.u32 1, %s1605_s24   ;;  %s967_s25 = sshll.u32 %s1750_s6, 3 }
  0x5f   : > { %s470_s16 = scalar_lea.sflag [#allocation6], %s469_s7  ;;  %s473_s28 = scalar_lea.vmem [#allocation5], %s967_s25 }
  0x60   : > { %1473 = dma.done.wait (%p1686_p13), %s470_s16, 128  }
  0x61   : > { %1475 = vsyncadd (%p1686_p13), %s470_s16, 4294967168 }
  0x62   : > { %1477 = dma.done.wait (%p54_p1), [#allocation6], 256  }
  0x63   : > { %1479 = vsyncadd (%p54_p1), [#allocation6], 4294967040 }
  0x64   : > { %1481 = dma.done.wait (%p54_p1), [#allocation9], 272  }
  0x65   : > { %1483 = vsyncadd (%p54_p1), [#allocation9], 4294967024 }
  0x66   : > { %1485 = dma.done.wait (%p54_p1), [#allocation12], 272  }
  0x67   : > { %1487 = vsyncadd (%p54_p1), [#allocation12], 4294967024 }
  0x68   : > { %1489 = dma.done.wait (%p54_p1), [#allocation15], 144  }
  0x69   : > { %1491 = vsyncadd (%p54_p1), [#allocation15], 4294967152  ;;  %v1016_v0 = vld [vmem:[%s473_s28] sm:$0xff]  ;;  %v639_v2 = vld [vmem:[%s1845_s10] sm:$0xf]  ;;  %vm641_vm0 = vcmask 130048  }
  0x6a   : > { %v1022_v1 = vld [vmem:[#allocation13 + $0x8] sm:$0xff]  ;;  %652 = vmatpush.bf16.msra.mxu2 %v1016_v0  ;;  %v1021_v3 = vld [vmem:[#allocation13] sm:$0xff]  ;;  %vm577_vm1 = vcmask 261120   ;;  %vm723_vm2 = vcmask 1043456   ;;  %v691_v14 = vld [vmem:[#allocation14] sm:$0xff]  ;;  %vm719_vm3 = vcmask 64512  }
  0x6b   : > { %684 = vmatpush.bf16.msra.mxu3 %v1022_v1  ;;  %v1018_v4 = vld [vmem:[#allocation7 + $0x8] sm:$0xff]  ;;  %v1017_v5 = vld [vmem:[#allocation7] sm:$0xff]  ;;  %v1147_v17 = vld [vmem:[#allocation8] ss:$0 sm:$0xff]  ;;  %s1012_s11 = sshll.u32 %s1605_s24, 3  ;;  %s1875_s22 = sld [smem:[#allocation33_spill]] }
  0x6c   : > { %587 = vmatpush.bf16.msra.mxu0 %v1018_v4  ;;  %v554_v6 = vld [vmem:[%s1754_s30] sm:$0xf]  ;;  %v1020_v26 = vld [vmem:[#allocation10 + $0x8] sm:$0xff]  ;;  %v1019_v27 = vld [vmem:[#allocation10] sm:$0xff]  ;;  %s552_s4 = scalar_lea.vmem [#allocation17], %s967_s25  ;;  %s776_s2 = scalar_lea.sflag [#allocation4], %s1750_s6 }
  0x6d   : > { %998 = vmatmul.msk.bf16.vlgmr.msra.gmra.mxu2 %vm641_vm0, %v639_v2  ;;  %v714_v12 = vld [vmem:[%s1843_s8] sm:$0xf]  ;;  %629 = vmatpush.bf16.msra.mxu1 %v1020_v26  ;;  %v1148_v28 = vld [vmem:[#allocation16] ss:$0 sm:$0xff]  ;;  %v1149_v33 = vld [vmem:[#allocation11] ss:$0 sm:$0xff] }
  0x6e   : > { %v725_v13 = vsel %vm723_vm2, %v714_v12, 0  ;;  %s788_s14 = sshll.u32 %s552_s4, 4  ;;  %s789_s14 = int_to_ptr.vmem [resolvable:$true] %s788_s14 }
  0x6f   : > { %685 = vmatpush.bf16.msra.mxu3 %v1021_v3 }
  0x70   : > { %588 = vmatpush.bf16.msra.mxu0 %v1017_v5 }
  0x71   : > { %630 = vmatpush.bf16.msra.mxu1 %v1019_v27  ;;  %s786_s27 = scalar_lea.hbm %s1875_s22, %s1012_s11  ;;  %s1444_s28 = scalar_lea.hbm %s1875_s22, 16 }
  0x72   : > { %s790_s26 = sshll.u32 %s786_s27, 4  ;;  %s791_s26 = int_to_ptr.hbm [resolvable:$true] %s790_s26 }
  0x73   : > { %984 = vmatmul.msk.bf16.vlgmr.msra.gmra.mxu0 %vm577_vm1, %v554_v6  ;;  %s1438_s30 = sshra.s32 %s791_s26, 4  ;;  %s1439_s30 = int_to_ptr.hbm [resolvable:$true] %s1438_s30 }
  0x74   : > { %734 = vmatpush.bf16.msrb.mxu0 %v725_v13  ;;  %997 = vmatmul.msk.bf16.vlgmr.msra.gmra.mxu1 %vm577_vm1, %v1016_v0  ;;  %s1440_s7 = scalar_lea.hbm %s1439_s30, 8  ;;  %p1445_p7 = scmp.lt.s32.totalorder %s1439_s30, %s1875_s22 }
  0x75   : > { %p1441_p1 = scmp.ne.s32.totalorder %s1439_s30, %s1440_s7  ;;  %p1446_p9 = scmp.lt.s32.totalorder %s1444_s28, %s1440_s7 }
  0x77   : > { %p1442_p3 = pnand %p1441_p1, %p1690_p0  ;;  %p1447_p8 = por %p1446_p9, %p1445_p7 }
  0x79   : > { %p1443_p13 = pneg %p1442_p3 }
  0x7b   : > { %p1448_p5 = pnand %p1447_p8, %p1443_p13 }
  0xf0   : > { %v654_v7 = vpop.f32.mrf.mxu2  ;;  %v590_v10 = vpop.f32.mrf.mxu0 }
  0xf1   : > { %v658_v8 = vpack.c.bf16 %v654_v7, %v654_v7  ;;  %v591_v20 = vadd.f32 %v1147_v17, %v590_v10  ;;  %v632_v34 = vpop.f32.mrf.mxu1 }
  0xf2   : > { %v633_v35 = vadd.f32 %v1149_v33, %v632_v34 }
  0xf3   : > { %1007 = vmatmul.msk.bf16.vlgmr.msra.gmra.mxu3 %vm577_vm1, %v658_v8  ;;  %v594_v22 = vpack.c.bf16 %v591_v20, %v591_v20 }
  0xf4   : > { %v637_v36 = vpack.c.bf16 %v633_v35, %v633_v35 }
  0xf6   : > { %v754_v41 = vunpack.c.l.b16 %v637_v36 }
  0xf8   : > { %v656_v9 = vpop.f32.mrf.mxu2  ;;  %v592_v11 = vpop.f32.mrf.mxu0 }
  0xf9   : > { %v634_v37 = vpop.f32.mrf.mxu1 }
  0xfa   : > { %v635_v39 = vadd.f32 %v1149_v33, %v634_v37 }
  0xfc   : > { %v638_v42 = vpack.c.bf16 %v635_v39, %v635_v39 }
  0xfe   : > { %v755_v44 = vunpack.c.l.b16 %v638_v42 }
 0x100   : > { %v756_v45 = vpack.c.b16 %v755_v44, %v754_v41 }
 0x102   : > { %768 = vmatpush.bf16.msrb.mxu1 %v756_v45 }
 0x176   : > { %v687_v15 = vpop.f32.mrf.mxu3 }
 0x177   : > { %v692_v16 = vadd.f32 %v691_v14, %v687_v15 }
 0x179   : > { %v693_v18 = vpack.c.bf16 %v692_v16, %v692_v16 }
 0x17b   : > { %v698_v19 = vsel %vm577_vm1, %v693_v18, 0 }
 0x17c   : > { %707 = vmatpush.bf16.xpose.msrb.mxu2 %v698_v19 }
 0x17e   : > { %v689_v21 = vpop.f32.mrf.mxu3 }
 0x183   : > { %1008 = vmatmul.msk.bf16.vlgmr.msrb.gmra.mxu2 %vm577_vm1, %v594_v22 }
 0x206   : > { %v709_v23 = vpop.f32.mrf.mxu2 }
 0x207   : > { %v713_v24 = vpack.c.bf16 %v709_v23, %v709_v23 }
 0x209   : > { %1009 = vmatmul.msk.bf16.vlgmr.msrb.gmra.mxu0 %vm719_vm3, %v713_v24 }
 0x20e   : > { %v711_v25 = vpop.f32.mrf.mxu2 }
 0x286   : > { %v736_v29 = vpop.f32.mrf.mxu0 }
 0x287   : > { %v737_v30 = vadd.f32 %v1148_v28, %v736_v29 }
 0x289   : > { %v740_v31 = vsel %vm641_vm0, %v737_v30, -inf }
 0x28a   : > { %741 = vmax.xlane.f32.xlu0 %v740_v31 }
 0x28e   : > { %v738_v32 = vpop.f32.mrf.mxu0 }
 0x2fd   : > { %v742_v38 = vpop.xlane.xlu0 %741 }
 0x2fe   : > { %v743_v40 = vsub.f32 %v737_v30, %v742_v38 }
 0x300   : > { %v744_v43 = vmul.f32 1.442695, %v743_v40 }
 0x302   : > { %1150 = vpow2.f32 %v744_v43 }
 0x308   : > { %v1151_v46 = vpop.eup %1150 }
 0x309   : > { %v746_v47 = vsel %vm641_vm0, %v1151_v46, 0.0 }
 0x30a   : > { %747 = vadd.xlane.f32.xlu0 %v746_v47 }
 0x37d   : > { %v748_v48 = vpop.xlane.xlu0 %747 }
 0x37e   : > { %1152 = vrcp.f32 %v748_v48 }
 0x384   : > { %v1153_v49 = vpop.eup %1152 }
 0x385   : > { %v750_v50 = vmul.f32 %v1153_v49, %v1151_v46 }
 0x387   : > { %v751_v51 = vpack.c.bf16 %v750_v50, %v750_v50 }
 0x389   : > { %1010 = vmatmul.msk.bf16.vlgmr.msrb.gmra.mxu1 %vm641_vm0, %v751_v51 }
 0x406   : > { %v770_v52 = vpop.f32.mrf.mxu1 }
 0x407   : > { %774 = vst [vmem:[%s552_s4] sm:$0xff] %v770_v52 }
 0x408   : > { %1451 = shalt.err (!%p1448_p5)
}
 0x409   : > { %1055 = dma.vmem_to_hbm [thread:$0]  (%p1690_p0), %s789_s14, 128, %s791_s26, %s776_s2  }
 0x40e   : > { %v772_v53 = vpop.f32.mrf.mxu1 }
 0x40f PF: > { %s802_s6 = sand.u32 1, %s1498_s17   ;;  %p1876_p10 = scmp.ge.s32.totalorder %s1510_s20, 2 }
 0x410   : > { %s803_s5 = scalar_lea.sflag [#allocation4], %s802_s6 }
 0x411   : > { %p1087_p11 = pnand %p1876_p10, %p1698_p6 }
 0x413   : > { %p1088_p12 = pneg %p1087_p11 }
 0x415   : > { %1493 = dma.done.wait (%p1088_p12), %s803_s5, 128  }
 0x416   : > { %1495 = vsyncadd (%p1088_p12), %s803_s5, 4294967168  ;;  %s1877_s13 = sld [smem:[#allocation25_spill]]  ;;  %p30_p2 = scmp.ge.s32.totalorder %s1666_s23, 4  }
 0x417   : > { %s1878_s17 = smov %s1502_s18  ;;  %s1879_s18 = smov %s1506_s19 }
 0x418   : > { %s1881_s20 = smov %s1666_s23  ;;  %32 = sbr.rel (!%p30_p2) target bundleno = 19 (0x13), region = 150 }
 0x41c   : > { %s1880_s19 = smov %s1877_s13 }
 0x41d   :  { %809 = vsyncpa [#allocation3], 1 }
 0x41e   :  { %811 = vsyncpa [#allocation3 + $0x1], 1 }
 0x41f   :  { %812 = vsyncpa [#allocation6], 1 }
 0x420   :  { %814 = vsyncpa [#allocation6 + $0x1], 1 }
 0x421   :  { %815 = vsyncpa [#allocation9], 1 }
 0x422   :  { %816 = vsyncpa [#allocation12], 1 }
 0x423   :  { %817 = vsyncpa [#allocation15], 1 }
 0x424   :  { %818 = vsyncpa [#allocation4], 1 }
 0x425   :  { %820 = vsyncpa [#allocation4 + $0x1], 1 }

</bundles_post_ra>
